<compile_context>
chip_gen: v5e
topology: v5e:2x2
jax: 0.10.0
libtpu: 0.0.40
codegen_flags: <defaults>
</compile_context>

<pallas_src>
import functools

import jax
import jax.numpy as jnp
import numpy as np
from jax.experimental import pallas as pl
from jax.experimental.pallas import tpu as pltpu

_EPS = 1e-5
_LANE = 128
_SUBLANE = 16            # bf16 tile granularity -> blocks legal for bf16 and f32


def _round_up(x, m):
    return ((x + m - 1) // m) * m


def _vmem_limit_bytes():
    """Scoped-VMEM request sized per generation (v7x: 64 MiB physical -> 48;
    v5e/v6e: 128 MiB -> 96)."""
    try:
        cap = pltpu.get_tpu_info().vmem_capacity_bytes
        return int(min((cap * 3) // 4, 96 * 1024 * 1024))
    except Exception:        # unknown chip / API -> keep the compiler default
        return None


def _pick_samples_per_tile(n, l_pad, cin_p, cout_p, compute_dtype, vmem_limit,
                           target_rows=16384):
    """Whole samples per tile: as many as fit the row target and the VMEM
    budget (double-buffered streams + in-kernel f32 conv temporaries)."""
    it = jnp.dtype(compute_dtype).itemsize
    limit = vmem_limit if vmem_limit else 32 * 1024 * 1024
    # double-buffered HBM streams (worst pass) ...
    stream = 2 * (it * cin_p + it * cin_p + it * cout_p + 4 * cout_p)
    # ... plus in-kernel temporaries: f32 rolled copies, folded operand, f32 acc
    temps = 12 * max(cin_p, cout_p) + 3 * it * cin_p + 4 * cout_p
    row_bytes = stream + temps
    cap_rows = max(l_pad, int(limit * 0.6) // row_bytes)
    rows = min(target_rows, cap_rows)
    return max(1, min(n, rows // l_pad))


# ------------------------------ in-kernel helpers -----------------------------
def _conv3_rows(x2d_f32, w_fold, compute_dtype):
    """k=3 / stride=1 / pad=1 conv over flattened (rows, Cin) input.

    Caller guarantees each sample owns >= 1 trailing all-zero pad row and each
    tile ends on a sample boundary, so circular rolls of the flattened rows
    reproduce Conv1d zero padding for every real row.  The three taps are
    folded into K: (rows, 3*Cin) @ (3*Cin, Cout) -> a single MXU matmul.
    """
    rows = x2d_f32.shape[0]
    # TODO(synk): roll directly in bf16 (skip the f32 round trip) once packed
    # sublane rotates are guaranteed; the extra casts hide under the DMA time.
    x_prev = pltpu.roll(x2d_f32, shift=1, axis=0)          # x[l-1]
    x_next = pltpu.roll(x2d_f32, shift=rows - 1, axis=0)   # x[l+1]
    x_cat = jnp.concatenate([x_prev.astype(compute_dtype),
                             x2d_f32.astype(compute_dtype),
                             x_next.astype(compute_dtype)], axis=-1)
    return jnp.dot(x_cat, w_fold, preferred_element_type=jnp.float32)


def _valid_mask(tn, l_pad, l_real, n_real, tile_idx):
    """(tn, l_pad, 1) mask of real (non-pad) rows of real (non-pad) samples."""
    samp = jax.lax.broadcasted_iota(jnp.int32, (tn, l_pad, 1), 0) + tile_idx * tn
    row = jax.lax.broadcasted_iota(jnp.int32, (tn, l_pad, 1), 1)
    return jnp.logical_and(samp < n_real, row < l_real)


# ---------------------------------- kernels -----------------------------------
def _k1_kernel(*refs, tn, l_pad, l_real, n_real, steps, compute_dtype, has_ds):
    """conv1 -> h1; accumulate per-channel sum/sumsq of h1 (and of the 1x1
    downsample pre-BN output) for the global BatchNorm statistics."""
    if has_ds:
        x_ref, w1_ref, wd_ref, h1_ref, st_ref = refs
    else:
        x_ref, w1_ref, h1_ref, st_ref = refs
        wd_ref = None

    @pl.when(pl.program_id(1) == 0)
    def _init():
        st_ref[...] = jnp.zeros_like(st_ref)

    t = pl.program_id(0) * steps + pl.program_id(1)      # global tile index
    c_out = h1_ref.shape[-1]
    mask = _valid_mask(tn, l_pad, l_real, n_real, t)

    x = x_ref[...]                                        # (rows, cin_p) bf16/f32
    h1 = _conv3_rows(x.astype(jnp.float32), w1_ref[...], compute_dtype)
    # Zero pad rows / pad samples *before* the store so the stats below reuse
    # the stored tensor (BN statistics must ignore padding).
    h1 = jnp.where(mask, h1.reshape(tn, l_pad, c_out), 0.0).reshape(tn * l_pad, c_out)
    h1_store = h1.astype(h1_ref.dtype)
    h1_ref[...] = h1_store

    # Stats on the values pass 2 will actually read (self-consistent in bf16).
    h1f = h1_store.astype(jnp.float32)
    st_ref[0:1, :] += jnp.sum(h1f, axis=0, keepdims=True)
    st_ref[1:2, :] += jnp.sum(h1f * h1f, axis=0, keepdims=True)

    if has_ds:
        # 1x1-conv residual branch: only its BN stats are needed here; x is
        # already in the compute dtype so the value is recomputed in pass 3
        # (cheaper than an HBM round trip).  x's pad rows are exactly zero.
        d = jnp.dot(x, wd_ref[...], preferred_element_type=jnp.float32)
        st_ref[2:3, :] += jnp.sum(d, axis=0, keepdims=True)
        st_ref[3:4, :] += jnp.sum(d * d, axis=0, keepdims=True)


def _k2_kernel(h1_ref, w2_ref, sc1_ref, sh1_ref, h2_ref, st_ref, *,
               tn, l_pad, l_real, n_real, steps, compute_dtype):
    """bn1 (folded scale/shift) + relu + conv2 -> h2; accumulate bn2 stats."""
    @pl.when(pl.program_id(1) == 0)
    def _init():
        st_ref[...] = jnp.zeros_like(st_ref)

    t = pl.program_id(0) * steps + pl.program_id(1)
    c = h2_ref.shape[-1]
    mask = _valid_mask(tn, l_pad, l_real, n_real, t)

    a1 = h1_ref[...].astype(jnp.float32) * sc1_ref[...] + sh1_ref[...]
    a1 = jnp.maximum(a1, 0.0)
    # BN's shift made pad rows / pad samples non-zero; zero them again so the
    # rolled conv sees correct zero padding and pad samples stay out of stats.
    a1 = jnp.where(mask, a1.reshape(tn, l_pad, c), 0.0).reshape(tn * l_pad, c)

    h2 = _conv3_rows(a1, w2_ref[...], compute_dtype)
    h2 = jnp.where(mask, h2.reshape(tn, l_pad, c), 0.0).reshape(tn * l_pad, c)
    h2_store = h2.astype(h2_ref.dtype)
    h2_ref[...] = h2_store

    h2f = h2_store.astype(jnp.float32)
    st_ref[0:1, :] += jnp.sum(h2f, axis=0, keepdims=True)
    st_ref[1:2, :] += jnp.sum(h2f * h2f, axis=0, keepdims=True)


def _k3_kernel(*refs, compute_dtype, has_ds):
    """bn2 + residual (identity or 1x1 conv + BN) + relu -> y."""
    if has_ds:
        h2_ref, x_ref, wd_ref, sc2_ref, sh2_ref, scd_ref, shd_ref, y_ref = refs
    else:
        h2_ref, x_ref, sc2_ref, sh2_ref, y_ref = refs

    out = h2_ref[...].astype(jnp.float32) * sc2_ref[...] + sh2_ref[...]
    if has_ds:
        d = jnp.dot(x_ref[...].astype(compute_dtype), wd_ref[...],
                    preferred_element_type=jnp.float32)
        res = d * scd_ref[...] + shd_ref[...]
    else:
        res = x_ref[...].astype(jnp.float32)
    y_ref[...] = jnp.maximum(out + res, 0.0).astype(y_ref.dtype)


# ---------------------------------- wrapper ------------------------------------
def _basic_block_1d_nlc_impl(x_nlc, params, *, use_bf16=True, tile_samples=None):
    """BasicBlock1D forward on channels-last (N, L, Cin); returns (N, L, Cout)."""
    N, L, Cin = x_nlc.shape
    Cout, w_cin, _ = params["w1"].shape
    assert w_cin == Cin
    has_ds = "wd" in params
    if not has_ds:
        assert Cin == Cout, "identity residual requires in_plane == out_plane"

    compute_dtype = jnp.bfloat16 if use_bf16 else jnp.float32
    interm_dtype = compute_dtype                # dtype of x/h1/h2 in HBM
    it = jnp.dtype(compute_dtype).itemsize

    cin_p = _round_up(Cin, _LANE)
    cout_p = _round_up(Cout, _LANE)
    # >= 1 trailing zero row per sample gives the rolled conv its zero padding.
    l_pad = _round_up(L + 1, _SUBLANE)

    vmem_cap = _vmem_limit_bytes()
    tn = tile_samples if tile_samples is not None else _pick_samples_per_tile(
        N, l_pad, cin_p, cout_p, compute_dtype, vmem_cap)
    tn = max(1, min(int(tn), N))

    # Ragged batch: pad N with zero samples to a whole number of tiles, and to
    # a multiple of the (v7x) core-parallel split for passes 1-2.
    n_tiles = -(-N // tn)
    p_cores = 2 if n_tiles >= 2 else 1
    n_tiles = -(-n_tiles // p_cores) * p_cores
    steps = n_tiles // p_cores
    n_pad = n_tiles * tn
    tile_r = tn * l_pad
    rows = n_pad * l_pad
    # TODO(synk): no intra-sample L tiling yet -- one sample's (l_pad, C_pad)
    # slab must fit in VMEM (fine for typical audio-encoder lengths).

    # ----------------- host-side prep (one fused cast+pad copy) ----------------
    x_pad = jnp.pad(x_nlc.astype(compute_dtype),
                    ((0, n_pad - N), (0, l_pad - L), (0, cin_p - Cin)))
    x2d = x_pad.reshape(rows, cin_p)

    def _prep_w3(w, ci_p, co_p):          # torch (Co,Ci,3) -> folded (3*ci_p, co_p)
        wt = jnp.transpose(w, (2, 1, 0)).astype(compute_dtype)       # (3, Ci, Co)
        wp = jnp.zeros((3, ci_p, co_p), compute_dtype)
        wp = wp.at[:, :wt.shape[1], :wt.shape[2]].set(wt)
        return wp.reshape(3 * ci_p, co_p)

    def _prep_vec(v, cp):
        return jnp.zeros((1, cp), jnp.float32).at[0, :v.shape[0]].set(
            v.astype(jnp.float32))

    w1p = _prep_w3(params["w1"], cin_p, cout_p)
    w2p = _prep_w3(params["w2"], cout_p, cout_p)
    g1p, b1p = _prep_vec(params["g1"], cout_p), _prep_vec(params["b1"], cout_p)
    g2p, b2p = _prep_vec(params["g2"], cout_p), _prep_vec(params["b2"], cout_p)
    if has_ds:
        wdp = jnp.zeros((cin_p, cout_p), compute_dtype).at[:Cin, :Cout].set(
            jnp.transpose(params["wd"][:, :, 0], (1, 0)).astype(compute_dtype))
        gdp, bdp = _prep_vec(params["gd"], cout_p), _prep_vec(params["bd"], cout_p)

    # ---------------------------------- specs ----------------------------------
    row2 = lambda c: pl.BlockSpec((tile_r, c), lambda p, s: (p * steps + s, 0))
    full2 = lambda r, c: pl.BlockSpec((r, c), lambda p, s: (0, 0))
    vec2 = pl.BlockSpec((1, cout_p), lambda p, s: (0, 0))
    stat2 = pl.BlockSpec((8, cout_p), lambda p, s: (p, 0))
    row1 = lambda c: pl.BlockSpec((tile_r, c), lambda i: (i, 0))
    full1 = lambda r, c: pl.BlockSpec((r, c), lambda i: (0, 0))
    vec1 = pl.BlockSpec((1, cout_p), lambda i: (0, 0))

    cp12 = pltpu.CompilerParams(dimension_semantics=("parallel", "arbitrary"),
                                vmem_limit_bytes=vmem_cap)
    cp3 = pltpu.CompilerParams(dimension_semantics=("parallel",),
                               vmem_limit_bytes=vmem_cap)

    kcommon = dict(tn=tn, l_pad=l_pad, l_real=L, n_real=N, steps=steps,
                   compute_dtype=compute_dtype)

    # ------------------- pass 1: conv1 (+ downsample stats) --------------------
    k1_in = [x2d, w1p] + ([wdp] if has_ds else [])
    k1_specs = [row2(cin_p), full2(3 * cin_p, cout_p)] + (
        [full2(cin_p, cout_p)] if has_ds else [])
    ce1 = pl.CostEstimate(
        flops=2 * rows * (3 + (1 if has_ds else 0)) * cin_p * cout_p,
        transcendentals=0,
        bytes_accessed=rows * (cin_p + cout_p) * it
        + (3 + (1 if has_ds else 0)) * cin_p * cout_p * it
        + 8 * p_cores * cout_p * 4)
    h1, st1 = pl.pallas_call(
        functools.partial(_k1_kernel, has_ds=has_ds, **kcommon),
        grid=(p_cores, steps),
        in_specs=k1_specs,
        out_specs=(row2(cout_p), stat2),
        out_shape=(jax.ShapeDtypeStruct((rows, cout_p), interm_dtype),
                   jax.ShapeDtypeStruct((8 * p_cores, cout_p), jnp.float32)),
        compiler_params=cp12,
        cost_estimate=ce1,
    )(*k1_in)
    st1 = st1.reshape(p_cores, 8, cout_p).sum(axis=0)    # merge per-core partials

    # ------- O(C) glue: fold global batch statistics into BN scale/shift -------
    cnt = float(N * L)

    def _bn_affine(s, ss, g, b):
        mean = s / cnt
        var = jnp.maximum(ss / cnt - mean * mean, 0.0)    # biased variance
        scale = g * jax.lax.rsqrt(var + _EPS)
        return scale, b - mean * scale

    sc1, sh1 = _bn_affine(st1[0:1], st1[1:2], g1p, b1p)

    # ---------------------- pass 2: bn1 + relu + conv2 --------------------------
    ce2 = pl.CostEstimate(
        flops=2 * rows * 3 * cout_p * cout_p + 6 * rows * cout_p,
        transcendentals=0,
        bytes_accessed=2 * rows * cout_p * it + 3 * cout_p * cout_p * it
        + 8 * p_cores * cout_p * 4)
    h2, st2 = pl.pallas_call(
        functools.partial(_k2_kernel, **kcommon),
        grid=(p_cores, steps),
        in_specs=[row2(cout_p), full2(3 * cout_p, cout_p), vec2, vec2],
        out_specs=(row2(cout_p), stat2),
        out_shape=(jax.ShapeDtypeStruct((rows, cout_p), interm_dtype),
                   jax.ShapeDtypeStruct((8 * p_cores, cout_p), jnp.float32)),
        compiler_params=cp12,
        cost_estimate=ce2,
    )(h1, w2p, sc1, sh1)
    st2 = st2.reshape(p_cores, 8, cout_p).sum(axis=0)

    sc2, sh2 = _bn_affine(st2[0:1], st2[1:2], g2p, b2p)

    # ---------------------- pass 3: bn2 + residual + relu -----------------------
    if has_ds:
        scd, shd = _bn_affine(st1[2:3], st1[3:4], gdp, bdp)
        k3_in = [h2, x2d, wdp, sc2, sh2, scd, shd]
        k3_specs = [row1(cout_p), row1(cin_p), full1(cin_p, cout_p),
                    vec1, vec1, vec1, vec1]
    else:
        k3_in = [h2, x2d, sc2, sh2]
        k3_specs = [row1(cout_p), row1(cin_p), vec1, vec1]
    ce3 = pl.CostEstimate(
        flops=(2 * rows * cin_p * cout_p if has_ds else 0) + 6 * rows * cout_p,
        transcendentals=0,
        bytes_accessed=rows * (cin_p + cout_p) * it + rows * cout_p * 4)
    # TODO(synk): a bf16 y output (and keeping the surrounding model
    # channels-last) would cut pass-3 / post-slice HBM traffic further.
    y2d = pl.pallas_call(
        functools.partial(_k3_kernel, compute_dtype=compute_dtype, has_ds=has_ds),
        grid=(n_tiles,),
        in_specs=k3_specs,
        out_specs=row1(cout_p),
        out_shape=jax.ShapeDtypeStruct((rows, cout_p), jnp.float32),
        compiler_params=cp3,
        cost_estimate=ce3,
    )(*k3_in)

    return y2d.reshape(n_pad, l_pad, cout_p)[:N, :L, :Cout]


basic_block_1d_nlc = jax.jit(_basic_block_1d_nlc_impl,
                             static_argnames=("use_bf16", "tile_samples"))


@functools.partial(jax.jit, static_argnames=("use_bf16", "tile_samples"))
def basic_block_1d(x_ncl, params, *, use_bf16=True, tile_samples=None):
    """PyTorch-layout entry point: x (N, Cin, L) -> (N, Cout, L).

    The NCL->NLC transpose is inside the same jit as the cast+pad, so XLA fuses
    them into a single copy; call basic_block_1d_nlc directly if the
    surrounding model is already channels-last.
    """
    y_nlc = _basic_block_1d_nlc_impl(jnp.transpose(x_ncl, (0, 2, 1)), params,
                                     use_bf16=use_bf16, tile_samples=tile_samples)
    return jnp.transpose(y_nlc, (0, 2, 1))


# ------------------------ pure-JAX reference (for checks) -----------------------
def _ref_forward(x, p):
    def conv(x, w, pad):
        return jax.lax.conv_general_dilated(
            x, w, window_strides=(1,), padding=[(pad, pad)],
            dimension_numbers=("NCH", "OIH", "NCH"))

    def bn(y, g, b):
        mean = jnp.mean(y, axis=(0, 2), keepdims=True)
        var = jnp.mean(jnp.square(y - mean), axis=(0, 2), keepdims=True)
        return (y - mean) * jax.lax.rsqrt(var + _EPS) * g[None, :, None] + b[None, :, None]

    h = jax.nn.relu(bn(conv(x, p["w1"], 1), p["g1"], p["b1"]))
    out = bn(conv(h, p["w2"], 1), p["g2"], p["b2"])
    res = bn(conv(x, p["wd"], 0), p["gd"], p["bd"]) if "wd" in p else x
    return jax.nn.relu(out + res)


def _init_params(key, in_plane, out_plane):
    ks = jax.random.split(key, 8)
    p = {
        "w1": 0.1 * jax.random.normal(ks[0], (out_plane, in_plane, 3), jnp.float32),
        "g1": 1.0 + 0.1 * jax.random.normal(ks[1], (out_plane,), jnp.float32),
        "b1": 0.1 * jax.random.normal(ks[2], (out_plane,), jnp.float32),
        "w2": 0.1 * jax.random.normal(ks[3], (out_plane, out_plane, 3), jnp.float32),
        "g2": 1.0 + 0.1 * jax.random.normal(ks[4], (out_plane,), jnp.float32),
        "b2": 0.1 * jax.random.normal(ks[5], (out_plane,), jnp.float32),
    }
    if in_plane != out_plane:
        p["wd"] = 0.1 * jax.random.normal(ks[6], (out_plane, in_plane, 1), jnp.float32)
        p["gd"] = 1.0 + 0.05 * jax.random.normal(ks[7], (out_plane,), jnp.float32)
        p["bd"] = jnp.zeros((out_plane,), jnp.float32)
    return p


if __name__ == "__main__":
    key = jax.random.PRNGKey(0)
    N, L = 2, 16
    k1, k2, k3, k4, k5 = jax.random.split(key, 5)

    # Case 1: in_plane != out_plane -> downsample (1x1 conv + BN) residual
    x1 = jax.random.normal(k1, (N, 4, L), jnp.float32)
    p1 = _init_params(k2, in_plane=4, out_plane=8)
    # Case 2: in_plane == out_plane -> identity residual
    x2 = jax.random.normal(k3, (N, 8, L), jnp.float32)
    p2 = _init_params(k4, in_plane=8, out_plane=8)

    for x, p, cout in ((x1, p1, 8), (x2, p2, 8)):
        ref = np.asarray(_ref_forward(x, p))
        # exact f32 path
        out_f32 = jax.block_until_ready(basic_block_1d(x, p, use_bf16=False))
        assert out_f32.shape == (x.shape[0], cout, L)
        np.testing.assert_allclose(np.asarray(out_f32), ref, rtol=1e-4, atol=1e-4)
        # bf16-MXU path (default; f32 accumulation, f32 BN math)
        out_bf16 = jax.block_until_ready(basic_block_1d(x, p, use_bf16=True))
        assert out_bf16.shape == (x.shape[0], cout, L)
        np.testing.assert_allclose(np.asarray(out_bf16), ref, rtol=8e-2, atol=8e-2)

    # Case 3: odd batch + forced 1-sample tiles -> exercises the ragged-N
    # padding, multi-tile stat accumulation and the 2-core ("parallel",
    # "arbitrary") grid for passes 1-2.
    x3 = jax.random.normal(k5, (3, 4, L), jnp.float32)
    ref3 = np.asarray(_ref_forward(x3, p1))
    out3_f32 = jax.block_until_ready(
        basic_block_1d(x3, p1, use_bf16=False, tile_samples=1))
    np.testing.assert_allclose(np.asarray(out3_f32), ref3, rtol=1e-4, atol=1e-4)
    out3_bf16 = jax.block_until_ready(
        basic_block_1d(x3, p1, use_bf16=True, tile_samples=1))
    np.testing.assert_allclose(np.asarray(out3_bf16), ref3, rtol=8e-2, atol=8e-2)

    print("KERNEL_OK")
</pallas_src>

<mosaic_0001>
module attributes {stable_mosaic.version = 11 : i64} {
  func.func @_k3_kernel(%arg0: i32, %arg1: memref<64x128xf32, #tpu.memory_space<vmem>>, %arg2: memref<64x128xf32, #tpu.memory_space<vmem>>, %arg3: memref<128x128xf32, #tpu.memory_space<vmem>>, %arg4: memref<1x128xf32, #tpu.memory_space<vmem>>, %arg5: memref<1x128xf32, #tpu.memory_space<vmem>>, %arg6: memref<1x128xf32, #tpu.memory_space<vmem>>, %arg7: memref<1x128xf32, #tpu.memory_space<vmem>>, %arg8: memref<64x128xf32, #tpu.memory_space<vmem>>) attributes {dimension_semantics = [#tpu.dimension_semantics<parallel>], iteration_bounds = array<i64: 1>, scalar_prefetch = 0 : i64, scratch_operands = 0 : i64, tpu.core_type = #tpu.core_type<tc>, window_params = [{transform_indices = @transform_0, window_bounds = array<i64: 64, 128>}, {transform_indices = @transform_1, window_bounds = array<i64: 64, 128>}, {pipeline_mode = #tpu.pipeline_mode<synchronous>, transform_indices = @transform_2, window_bounds = array<i64: 128, 128>}, {pipeline_mode = #tpu.pipeline_mode<synchronous>, transform_indices = @transform_3, window_bounds = array<i64: 1, 128>}, {pipeline_mode = #tpu.pipeline_mode<synchronous>, transform_indices = @transform_4, window_bounds = array<i64: 1, 128>}, {pipeline_mode = #tpu.pipeline_mode<synchronous>, transform_indices = @transform_5, window_bounds = array<i64: 1, 128>}, {pipeline_mode = #tpu.pipeline_mode<synchronous>, transform_indices = @transform_6, window_bounds = array<i64: 1, 128>}, {transform_indices = @transform_7, window_bounds = array<i64: 64, 128>}]} {
    %c0 = arith.constant 0 : index
    %c0_0 = arith.constant 0 : index
    %0 = vector.load %arg1[%c0, %c0_0] : memref<64x128xf32, #tpu.memory_space<vmem>>, vector<64x128xf32>
    %c0_1 = arith.constant 0 : index
    %c0_2 = arith.constant 0 : index
    %1 = vector.load %arg4[%c0_1, %c0_2] : memref<1x128xf32, #tpu.memory_space<vmem>>, vector<1x128xf32>
    %2 = vector.broadcast %1 : vector<1x128xf32> to vector<64x128xf32>
    %3 = arith.mulf %0, %2 : vector<64x128xf32>
    %c0_3 = arith.constant 0 : index
    %c0_4 = arith.constant 0 : index
    %4 = vector.load %arg5[%c0_3, %c0_4] : memref<1x128xf32, #tpu.memory_space<vmem>>, vector<1x128xf32>
    %5 = vector.broadcast %4 : vector<1x128xf32> to vector<64x128xf32>
    %6 = arith.addf %3, %5 : vector<64x128xf32>
    %c0_5 = arith.constant 0 : index
    %c0_6 = arith.constant 0 : index
    %7 = vector.load %arg2[%c0_5, %c0_6] : memref<64x128xf32, #tpu.memory_space<vmem>>, vector<64x128xf32>
    %c0_7 = arith.constant 0 : index
    %c0_8 = arith.constant 0 : index
    %8 = vector.load %arg3[%c0_7, %c0_8] : memref<128x128xf32, #tpu.memory_space<vmem>>, vector<128x128xf32>
    %cst = arith.constant dense<0.000000e+00> : vector<64x128xf32>
    %9 = tpu.matmul %7, %8, %cst {dimension_numbers = #tpu.dot_dimension_numbers<[1], [0], [0], [1], [0, 0, 1, 1], [], []>} : vector<64x128xf32>, vector<128x128xf32>, vector<64x128xf32> -> vector<64x128xf32>
    %c0_9 = arith.constant 0 : index
    %c0_10 = arith.constant 0 : index
    %10 = vector.load %arg6[%c0_9, %c0_10] : memref<1x128xf32, #tpu.memory_space<vmem>>, vector<1x128xf32>
    %11 = vector.broadcast %10 : vector<1x128xf32> to vector<64x128xf32>
    %12 = arith.mulf %9, %11 : vector<64x128xf32>
    %c0_11 = arith.constant 0 : index
    %c0_12 = arith.constant 0 : index
    %13 = vector.load %arg7[%c0_11, %c0_12] : memref<1x128xf32, #tpu.memory_space<vmem>>, vector<1x128xf32>
    %14 = vector.broadcast %13 : vector<1x128xf32> to vector<64x128xf32>
    %15 = arith.addf %12, %14 : vector<64x128xf32>
    %16 = arith.addf %6, %15 : vector<64x128xf32>
    %cst_13 = arith.constant 0.000000e+00 : f32
    %17 = vector.broadcast %cst_13 : f32 to vector<64x128xf32>
    %18 = arith.maximumf %16, %17 : vector<64x128xf32>
    %c0_14 = arith.constant 0 : index
    %c0_15 = arith.constant 0 : index
    %19 = vector.load %arg8[%c0_14, %c0_15] : memref<64x128xf32, #tpu.memory_space<vmem>>, vector<64x128xf32>
    tpu.vector_store %arg8[%c0_14, %c0_15], %18 {strides = array<i32>} : memref<64x128xf32, #tpu.memory_space<vmem>>, vector<64x128xf32>,
    return
  }
  func.func @transform_0(%arg0: i32) -> (i32, i32) {
    %c0_i32 = arith.constant 0 : i32
    %c0_i32_0 = arith.constant 0 : i32
    return %arg0, %c0_i32 : i32, i32
  }
  func.func @transform_1(%arg0: i32) -> (i32, i32) {
    %c0_i32 = arith.constant 0 : i32
    %c0_i32_0 = arith.constant 0 : i32
    return %arg0, %c0_i32 : i32, i32
  }
  func.func @transform_2(%arg0: i32) -> (i32, i32) {
    %c0_i32 = arith.constant 0 : i32
    %c0_i32_0 = arith.constant 0 : i32
    %c0_i32_1 = arith.constant 0 : i32
    return %c0_i32, %c0_i32_0 : i32, i32
  }
  func.func @transform_3(%arg0: i32) -> (i32, i32) {
    %c0_i32 = arith.constant 0 : i32
    %c0_i32_0 = arith.constant 0 : i32
    %c0_i32_1 = arith.constant 0 : i32
    return %c0_i32, %c0_i32_0 : i32, i32
  }
  func.func @transform_4(%arg0: i32) -> (i32, i32) {
    %c0_i32 = arith.constant 0 : i32
    %c0_i32_0 = arith.constant 0 : i32
    %c0_i32_1 = arith.constant 0 : i32
    return %c0_i32, %c0_i32_0 : i32, i32
  }
  func.func @transform_5(%arg0: i32) -> (i32, i32) {
    %c0_i32 = arith.constant 0 : i32
    %c0_i32_0 = arith.constant 0 : i32
    %c0_i32_1 = arith.constant 0 : i32
    return %c0_i32, %c0_i32_0 : i32, i32
  }
  func.func @transform_6(%arg0: i32) -> (i32, i32) {
    %c0_i32 = arith.constant 0 : i32
    %c0_i32_0 = arith.constant 0 : i32
    %c0_i32_1 = arith.constant 0 : i32
    return %c0_i32, %c0_i32_0 : i32, i32
  }
  func.func @transform_7(%arg0: i32) -> (i32, i32) {
    %c0_i32 = arith.constant 0 : i32
    %c0_i32_0 = arith.constant 0 : i32
    return %arg0, %c0_i32 : i32, i32
  }
}

module attributes {stable_mosaic.version = 11 : i64} {
  func.func @_k1_kernel(%arg0: i32, %arg1: i32, %arg2: memref<64x128xf32, #tpu.memory_space<vmem>>, %arg3: memref<384x128xf32, #tpu.memory_space<vmem>>, %arg4: memref<128x128xf32, #tpu.memory_space<vmem>>, %arg5: memref<64x128xf32, #tpu.memory_space<vmem>>, %arg6: memref<8x128xf32, #tpu.memory_space<vmem>>) attributes {dimension_semantics = [#tpu.dimension_semantics<parallel>, #tpu.dimension_semantics<arbitrary>], iteration_bounds = array<i64: 1, 1>, scalar_prefetch = 0 : i64, scratch_operands = 0 : i64, tpu.core_type = #tpu.core_type<tc>, window_params = [{transform_indices = @transform_0, window_bounds = array<i64: 64, 128>}, {pipeline_mode = #tpu.pipeline_mode<synchronous>, transform_indices = @transform_1, window_bounds = array<i64: 384, 128>}, {pipeline_mode = #tpu.pipeline_mode<synchronous>, transform_indices = @transform_2, window_bounds = array<i64: 128, 128>}, {transform_indices = @transform_3, window_bounds = array<i64: 64, 128>}, {transform_indices = @transform_4, window_bounds = array<i64: 8, 128>}]} {
    %c0_i32 = arith.constant 0 : i32
    %0 = arith.cmpi eq, %arg1, %c0_i32 : i32
    %1 = arith.extui %0 : i1 to i32
    %c0_i32_0 = arith.constant 0 : i32
    %2 = arith.cmpi ne, %1, %c0_i32_0 : i32
    scf.if %2 {
      %cst_29 = arith.constant 0.000000e+00 : f32
      %52 = vector.broadcast %cst_29 : f32 to vector<8x128xf32>
      %c0_30 = arith.constant 0 : index
      %c0_31 = arith.constant 0 : index
      %53 = vector.load %arg6[%c0_30, %c0_31] : memref<8x128xf32, #tpu.memory_space<vmem>>, vector<8x128xf32>
      tpu.vector_store %arg6[%c0_30, %c0_31], %52 {strides = array<i32>} : memref<8x128xf32, #tpu.memory_space<vmem>>, vector<8x128xf32>,
    } else {
    }
    %c1_i32 = arith.constant 1 : i32
    %3 = arith.muli %arg0, %c1_i32 : i32
    %4 = arith.addi %3, %arg1 : i32
    %5 = tpu.iota {dimensions = array<i32: 0>} : vector<2x32x1xi32>
    %c2_i32 = arith.constant 2 : i32
    %6 = arith.muli %4, %c2_i32 : i32
    %7 = vector.broadcast %6 : i32 to vector<2x32x1xi32>
    %8 = arith.addi %5, %7 : vector<2x32x1xi32>
    %9 = tpu.iota {dimensions = array<i32: 1>} : vector<2x32x1xi32>
    %c2_i32_1 = arith.constant 2 : i32
    %10 = vector.broadcast %c2_i32_1 : i32 to vector<2x32x1xi32>
    %11 = arith.cmpi slt, %8, %10 : vector<2x32x1xi32>
    %c16_i32 = arith.constant 16 : i32
    %12 = vector.broadcast %c16_i32 : i32 to vector<2x32x1xi32>
    %13 = arith.cmpi slt, %9, %12 : vector<2x32x1xi32>
    %14 = arith.andi %11, %13 : vector<2x32x1xi1>
    %c0 = arith.constant 0 : index
    %c0_2 = arith.constant 0 : index
    %15 = vector.load %arg2[%c0, %c0_2] : memref<64x128xf32, #tpu.memory_space<vmem>>, vector<64x128xf32>
    %c0_3 = arith.constant 0 : index
    %c0_4 = arith.constant 0 : index
    %16 = vector.load %arg3[%c0_3, %c0_4] : memref<384x128xf32, #tpu.memory_space<vmem>>, vector<384x128xf32>
    %c1_i32_5 = arith.constant 1 : i32
    %17 = tpu.dynamic_rotate %15 by %c1_i32_5 dim 0 : vector<64x128xf32>, i32 -> vector<64x128xf32>
    %c63_i32 = arith.constant 63 : i32
    %18 = tpu.dynamic_rotate %15 by %c63_i32 dim 0 : vector<64x128xf32>, i32 -> vector<64x128xf32>
    %19 = tpu.concatenate %17, %15, %18 in 1 : vector<64x128xf32>, vector<64x128xf32>, vector<64x128xf32> -> vector<64x384xf32>
    %cst = arith.constant dense<0.000000e+00> : vector<64x128xf32>
    %20 = tpu.matmul %19, %16, %cst {dimension_numbers = #tpu.dot_dimension_numbers<[1], [0], [0], [1], [0, 0, 1, 1], [], []>} : vector<64x384xf32>, vector<384x128xf32>, vector<64x128xf32> -> vector<64x128xf32>
    %21 = vector.shape_cast %20 : vector<64x128xf32> to vector<2x32x128xf32>
    %cst_6 = arith.constant 0.000000e+00 : f32
    %22 = vector.shape_cast %14 : vector<2x32x1xi1> to vector<2x32x1xi1>
    %23 = vector.broadcast %22 : vector<2x32x1xi1> to vector<2x32x128xi1>
    %24 = vector.broadcast %cst_6 : f32 to vector<2x32x128xf32>
    %25 = arith.select %23, %21, %24 : vector<2x32x128xi1>, vector<2x32x128xf32>
    %26 = vector.shape_cast %25 : vector<2x32x128xf32> to vector<64x128xf32>
    %c0_7 = arith.constant 0 : index
    %c0_8 = arith.constant 0 : index
    %27 = vector.load %arg5[%c0_7, %c0_8] : memref<64x128xf32, #tpu.memory_space<vmem>>, vector<64x128xf32>
    tpu.vector_store %arg5[%c0_7, %c0_8], %26 {strides = array<i32>} : memref<64x128xf32, #tpu.memory_space<vmem>>, vector<64x128xf32>,
    %c0_9 = arith.constant 0 : index
    %c0_10 = arith.constant 0 : index
    %28 = vector.load %arg6[%c0_9, %c0_10] : memref<8x128xf32, #tpu.memory_space<vmem>>, vector<1x128xf32>
    %cst_11 = arith.constant dense<0.000000e+00> : vector<128xf32>
    %29 = vector.multi_reduction <add>, %26, %cst_11 [0] : vector<64x128xf32> to vector<128xf32>
    %30 = vector.shape_cast %29 : vector<128xf32> to vector<1x128xf32>
    %31 = arith.addf %28, %30 : vector<1x128xf32>
    %c0_12 = arith.constant 0 : index
    %c0_13 = arith.constant 0 : index
    %32 = vector.load %arg6[%c0_12, %c0_13] : memref<8x128xf32, #tpu.memory_space<vmem>>, vector<1x128xf32>
    tpu.vector_store %arg6[%c0_12, %c0_13], %31 {strides = array<i32>} : memref<8x128xf32, #tpu.memory_space<vmem>>, vector<1x128xf32>,
    %c1 = arith.constant 1 : index
    %c0_14 = arith.constant 0 : index
    %33 = vector.load %arg6[%c1, %c0_14] : memref<8x128xf32, #tpu.memory_space<vmem>>, vector<1x128xf32>
    %34 = arith.mulf %26, %26 : vector<64x128xf32>
    %cst_15 = arith.constant dense<0.000000e+00> : vector<128xf32>
    %35 = vector.multi_reduction <add>, %34, %cst_15 [0] : vector<64x128xf32> to vector<128xf32>
    %36 = vector.shape_cast %35 : vector<128xf32> to vector<1x128xf32>
    %37 = arith.addf %33, %36 : vector<1x128xf32>
    %c1_16 = arith.constant 1 : index
    %c0_17 = arith.constant 0 : index
    %38 = vector.load %arg6[%c1_16, %c0_17] : memref<8x128xf32, #tpu.memory_space<vmem>>, vector<1x128xf32>
    tpu.vector_store %arg6[%c1_16, %c0_17], %37 {strides = array<i32>} : memref<8x128xf32, #tpu.memory_space<vmem>>, vector<1x128xf32>,
    %c0_18 = arith.constant 0 : index
    %c0_19 = arith.constant 0 : index
    %39 = vector.load %arg4[%c0_18, %c0_19] : memref<128x128xf32, #tpu.memory_space<vmem>>, vector<128x128xf32>
    %cst_20 = arith.constant dense<0.000000e+00> : vector<64x128xf32>
    %40 = tpu.matmul %15, %39, %cst_20 {dimension_numbers = #tpu.dot_dimension_numbers<[1], [0], [0], [1], [0, 0, 1, 1], [], []>} : vector<64x128xf32>, vector<128x128xf32>, vector<64x128xf32> -> vector<64x128xf32>
    %c2 = arith.constant 2 : index
    %c0_21 = arith.constant 0 : index
    %41 = vector.load %arg6[%c2, %c0_21] : memref<8x128xf32, #tpu.memory_space<vmem>>, vector<1x128xf32>
    %cst_22 = arith.constant dense<0.000000e+00> : vector<128xf32>
    %42 = vector.multi_reduction <add>, %40, %cst_22 [0] : vector<64x128xf32> to vector<128xf32>
    %43 = vector.shape_cast %42 : vector<128xf32> to vector<1x128xf32>
    %44 = arith.addf %41, %43 : vector<1x128xf32>
    %c2_23 = arith.constant 2 : index
    %c0_24 = arith.constant 0 : index
    %45 = vector.load %arg6[%c2_23, %c0_24] : memref<8x128xf32, #tpu.memory_space<vmem>>, vector<1x128xf32>
    tpu.vector_store %arg6[%c2_23, %c0_24], %44 {strides = array<i32>} : memref<8x128xf32, #tpu.memory_space<vmem>>, vector<1x128xf32>,
    %c3 = arith.constant 3 : index
    %c0_25 = arith.constant 0 : index
    %46 = vector.load %arg6[%c3, %c0_25] : memref<8x128xf32, #tpu.memory_space<vmem>>, vector<1x128xf32>
    %47 = arith.mulf %40, %40 : vector<64x128xf32>
    %cst_26 = arith.constant dense<0.000000e+00> : vector<128xf32>
    %48 = vector.multi_reduction <add>, %47, %cst_26 [0] : vector<64x128xf32> to vector<128xf32>
    %49 = vector.shape_cast %48 : vector<128xf32> to vector<1x128xf32>
    %50 = arith.addf %46, %49 : vector<1x128xf32>
    %c3_27 = arith.constant 3 : index
    %c0_28 = arith.constant 0 : index
    %51 = vector.load %arg6[%c3_27, %c0_28] : memref<8x128xf32, #tpu.memory_space<vmem>>, vector<1x128xf32>
    tpu.vector_store %arg6[%c3_27, %c0_28], %50 {strides = array<i32>} : memref<8x128xf32, #tpu.memory_space<vmem>>, vector<1x128xf32>,
    return
  }
  func.func @transform_0(%arg0: i32, %arg1: i32) -> (i32, i32) {
    %c1_i32 = arith.constant 1 : i32
    %0 = arith.muli %arg0, %c1_i32 : i32
    %1 = arith.addi %0, %arg1 : i32
    %c0_i32 = arith.constant 0 : i32
    %c0_i32_0 = arith.constant 0 : i32
    return %1, %c0_i32 : i32, i32
  }
  func.func @transform_1(%arg0: i32, %arg1: i32) -> (i32, i32) {
    %c0_i32 = arith.constant 0 : i32
    %c0_i32_0 = arith.constant 0 : i32
    %c0_i32_1 = arith.constant 0 : i32
    return %c0_i32, %c0_i32_0 : i32, i32
  }
  func.func @transform_2(%arg0: i32, %arg1: i32) -> (i32, i32) {
    %c0_i32 = arith.constant 0 : i32
    %c0_i32_0 = arith.constant 0 : i32
    %c0_i32_1 = arith.constant 0 : i32
    return %c0_i32, %c0_i32_0 : i32, i32
  }
  func.func @transform_3(%arg0: i32, %arg1: i32) -> (i32, i32) {
    %c1_i32 = arith.constant 1 : i32
    %0 = arith.muli %arg0, %c1_i32 : i32
    %1 = arith.addi %0, %arg1 : i32
    %c0_i32 = arith.constant 0 : i32
    %c0_i32_0 = arith.constant 0 : i32
    return %1, %c0_i32 : i32, i32
  }
  func.func @transform_4(%arg0: i32, %arg1: i32) -> (i32, i32) {
    %c0_i32 = arith.constant 0 : i32
    %c0_i32_0 = arith.constant 0 : i32
    return %arg0, %c0_i32 : i32, i32
  }
}

module attributes {stable_mosaic.version = 11 : i64} {
  func.func @_k2_kernel(%arg0: i32, %arg1: i32, %arg2: memref<64x128xf32, #tpu.memory_space<vmem>>, %arg3: memref<384x128xf32, #tpu.memory_space<vmem>>, %arg4: memref<1x128xf32, #tpu.memory_space<vmem>>, %arg5: memref<1x128xf32, #tpu.memory_space<vmem>>, %arg6: memref<64x128xf32, #tpu.memory_space<vmem>>, %arg7: memref<8x128xf32, #tpu.memory_space<vmem>>) attributes {dimension_semantics = [#tpu.dimension_semantics<parallel>, #tpu.dimension_semantics<arbitrary>], iteration_bounds = array<i64: 1, 1>, scalar_prefetch = 0 : i64, scratch_operands = 0 : i64, tpu.core_type = #tpu.core_type<tc>, window_params = [{transform_indices = @transform_0, window_bounds = array<i64: 64, 128>}, {pipeline_mode = #tpu.pipeline_mode<synchronous>, transform_indices = @transform_1, window_bounds = array<i64: 384, 128>}, {pipeline_mode = #tpu.pipeline_mode<synchronous>, transform_indices = @transform_2, window_bounds = array<i64: 1, 128>}, {pipeline_mode = #tpu.pipeline_mode<synchronous>, transform_indices = @transform_3, window_bounds = array<i64: 1, 128>}, {transform_indices = @transform_4, window_bounds = array<i64: 64, 128>}, {transform_indices = @transform_5, window_bounds = array<i64: 8, 128>}]} {
    %c0_i32 = arith.constant 0 : i32
    %0 = arith.cmpi eq, %arg1, %c0_i32 : i32
    %1 = arith.extui %0 : i1 to i32
    %c0_i32_0 = arith.constant 0 : i32
    %2 = arith.cmpi ne, %1, %c0_i32_0 : i32
    scf.if %2 {
      %cst_24 = arith.constant 0.000000e+00 : f32
      %53 = vector.broadcast %cst_24 : f32 to vector<8x128xf32>
      %c0_25 = arith.constant 0 : index
      %c0_26 = arith.constant 0 : index
      %54 = vector.load %arg7[%c0_25, %c0_26] : memref<8x128xf32, #tpu.memory_space<vmem>>, vector<8x128xf32>
      tpu.vector_store %arg7[%c0_25, %c0_26], %53 {strides = array<i32>} : memref<8x128xf32, #tpu.memory_space<vmem>>, vector<8x128xf32>,
    } else {
    }
    %c1_i32 = arith.constant 1 : i32
    %3 = arith.muli %arg0, %c1_i32 : i32
    %4 = arith.addi %3, %arg1 : i32
    %5 = tpu.iota {dimensions = array<i32: 0>} : vector<2x32x1xi32>
    %c2_i32 = arith.constant 2 : i32
    %6 = arith.muli %4, %c2_i32 : i32
    %7 = vector.broadcast %6 : i32 to vector<2x32x1xi32>
    %8 = arith.addi %5, %7 : vector<2x32x1xi32>
    %9 = tpu.iota {dimensions = array<i32: 1>} : vector<2x32x1xi32>
    %c2_i32_1 = arith.constant 2 : i32
    %10 = vector.broadcast %c2_i32_1 : i32 to vector<2x32x1xi32>
    %11 = arith.cmpi slt, %8, %10 : vector<2x32x1xi32>
    %c16_i32 = arith.constant 16 : i32
    %12 = vector.broadcast %c16_i32 : i32 to vector<2x32x1xi32>
    %13 = arith.cmpi slt, %9, %12 : vector<2x32x1xi32>
    %14 = arith.andi %11, %13 : vector<2x32x1xi1>
    %c0 = arith.constant 0 : index
    %c0_2 = arith.constant 0 : index
    %15 = vector.load %arg2[%c0, %c0_2] : memref<64x128xf32, #tpu.memory_space<vmem>>, vector<64x128xf32>
    %c0_3 = arith.constant 0 : index
    %c0_4 = arith.constant 0 : index
    %16 = vector.load %arg4[%c0_3, %c0_4] : memref<1x128xf32, #tpu.memory_space<vmem>>, vector<1x128xf32>
    %17 = vector.broadcast %16 : vector<1x128xf32> to vector<64x128xf32>
    %18 = arith.mulf %15, %17 : vector<64x128xf32>
    %c0_5 = arith.constant 0 : index
    %c0_6 = arith.constant 0 : index
    %19 = vector.load %arg5[%c0_5, %c0_6] : memref<1x128xf32, #tpu.memory_space<vmem>>, vector<1x128xf32>
    %20 = vector.broadcast %19 : vector<1x128xf32> to vector<64x128xf32>
    %21 = arith.addf %18, %20 : vector<64x128xf32>
    %cst = arith.constant 0.000000e+00 : f32
    %22 = vector.broadcast %cst : f32 to vector<64x128xf32>
    %23 = arith.maximumf %21, %22 : vector<64x128xf32>
    %24 = vector.shape_cast %23 : vector<64x128xf32> to vector<2x32x128xf32>
    %cst_7 = arith.constant 0.000000e+00 : f32
    %25 = vector.shape_cast %14 : vector<2x32x1xi1> to vector<2x32x1xi1>
    %26 = vector.broadcast %25 : vector<2x32x1xi1> to vector<2x32x128xi1>
    %27 = vector.broadcast %cst_7 : f32 to vector<2x32x128xf32>
    %28 = arith.select %26, %24, %27 : vector<2x32x128xi1>, vector<2x32x128xf32>
    %29 = vector.shape_cast %28 : vector<2x32x128xf32> to vector<64x128xf32>
    %c0_8 = arith.constant 0 : index
    %c0_9 = arith.constant 0 : index
    %30 = vector.load %arg3[%c0_8, %c0_9] : memref<384x128xf32, #tpu.memory_space<vmem>>, vector<384x128xf32>
    %c1_i32_10 = arith.constant 1 : i32
    %31 = tpu.dynamic_rotate %29 by %c1_i32_10 dim 0 : vector<64x128xf32>, i32 -> vector<64x128xf32>
    %c63_i32 = arith.constant 63 : i32
    %32 = tpu.dynamic_rotate %29 by %c63_i32 dim 0 : vector<64x128xf32>, i32 -> vector<64x128xf32>
    %33 = tpu.concatenate %31, %29, %32 in 1 : vector<64x128xf32>, vector<64x128xf32>, vector<64x128xf32> -> vector<64x384xf32>
    %cst_11 = arith.constant dense<0.000000e+00> : vector<64x128xf32>
    %34 = tpu.matmul %33, %30, %cst_11 {dimension_numbers = #tpu.dot_dimension_numbers<[1], [0], [0], [1], [0, 0, 1, 1], [], []>} : vector<64x384xf32>, vector<384x128xf32>, vector<64x128xf32> -> vector<64x128xf32>
    %35 = vector.shape_cast %34 : vector<64x128xf32> to vector<2x32x128xf32>
    %cst_12 = arith.constant 0.000000e+00 : f32
    %36 = vector.shape_cast %14 : vector<2x32x1xi1> to vector<2x32x1xi1>
    %37 = vector.broadcast %36 : vector<2x32x1xi1> to vector<2x32x128xi1>
    %38 = vector.broadcast %cst_12 : f32 to vector<2x32x128xf32>
    %39 = arith.select %37, %35, %38 : vector<2x32x128xi1>, vector<2x32x128xf32>
    %40 = vector.shape_cast %39 : vector<2x32x128xf32> to vector<64x128xf32>
    %c0_13 = arith.constant 0 : index
    %c0_14 = arith.constant 0 : index
    %41 = vector.load %arg6[%c0_13, %c0_14] : memref<64x128xf32, #tpu.memory_space<vmem>>, vector<64x128xf32>
    tpu.vector_store %arg6[%c0_13, %c0_14], %40 {strides = array<i32>} : memref<64x128xf32, #tpu.memory_space<vmem>>, vector<64x128xf32>,
    %c0_15 = arith.constant 0 : index
    %c0_16 = arith.constant 0 : index
    %42 = vector.load %arg7[%c0_15, %c0_16] : memref<8x128xf32, #tpu.memory_space<vmem>>, vector<1x128xf32>
    %cst_17 = arith.constant dense<0.000000e+00> : vector<128xf32>
    %43 = vector.multi_reduction <add>, %40, %cst_17 [0] : vector<64x128xf32> to vector<128xf32>
    %44 = vector.shape_cast %43 : vector<128xf32> to vector<1x128xf32>
    %45 = arith.addf %42, %44 : vector<1x128xf32>
    %c0_18 = arith.constant 0 : index
    %c0_19 = arith.constant 0 : index
    %46 = vector.load %arg7[%c0_18, %c0_19] : memref<8x128xf32, #tpu.memory_space<vmem>>, vector<1x128xf32>
    tpu.vector_store %arg7[%c0_18, %c0_19], %45 {strides = array<i32>} : memref<8x128xf32, #tpu.memory_space<vmem>>, vector<1x128xf32>,
    %c1 = arith.constant 1 : index
    %c0_20 = arith.constant 0 : index
    %47 = vector.load %arg7[%c1, %c0_20] : memref<8x128xf32, #tpu.memory_space<vmem>>, vector<1x128xf32>
    %48 = arith.mulf %40, %40 : vector<64x128xf32>
    %cst_21 = arith.constant dense<0.000000e+00> : vector<128xf32>
    %49 = vector.multi_reduction <add>, %48, %cst_21 [0] : vector<64x128xf32> to vector<128xf32>
    %50 = vector.shape_cast %49 : vector<128xf32> to vector<1x128xf32>
    %51 = arith.addf %47, %50 : vector<1x128xf32>
    %c1_22 = arith.constant 1 : index
    %c0_23 = arith.constant 0 : index
    %52 = vector.load %arg7[%c1_22, %c0_23] : memref<8x128xf32, #tpu.memory_space<vmem>>, vector<1x128xf32>
    tpu.vector_store %arg7[%c1_22, %c0_23], %51 {strides = array<i32>} : memref<8x128xf32, #tpu.memory_space<vmem>>, vector<1x128xf32>,
    return
  }
  func.func @transform_0(%arg0: i32, %arg1: i32) -> (i32, i32) {
    %c1_i32 = arith.constant 1 : i32
    %0 = arith.muli %arg0, %c1_i32 : i32
    %1 = arith.addi %0, %arg1 : i32
    %c0_i32 = arith.constant 0 : i32
    %c0_i32_0 = arith.constant 0 : i32
    return %1, %c0_i32 : i32, i32
  }
  func.func @transform_1(%arg0: i32, %arg1: i32) -> (i32, i32) {
    %c0_i32 = arith.constant 0 : i32
    %c0_i32_0 = arith.constant 0 : i32
    %c0_i32_1 = arith.constant 0 : i32
    return %c0_i32, %c0_i32_0 : i32, i32
  }
  func.func @transform_2(%arg0: i32, %arg1: i32) -> (i32, i32) {
    %c0_i32 = arith.constant 0 : i32
    %c0_i32_0 = arith.constant 0 : i32
    %c0_i32_1 = arith.constant 0 : i32
    return %c0_i32, %c0_i32_0 : i32, i32
  }
  func.func @transform_3(%arg0: i32, %arg1: i32) -> (i32, i32) {
    %c0_i32 = arith.constant 0 : i32
    %c0_i32_0 = arith.constant 0 : i32
    %c0_i32_1 = arith.constant 0 : i32
    return %c0_i32, %c0_i32_0 : i32, i32
  }
  func.func @transform_4(%arg0: i32, %arg1: i32) -> (i32, i32) {
    %c1_i32 = arith.constant 1 : i32
    %0 = arith.muli %arg0, %c1_i32 : i32
    %1 = arith.addi %0, %arg1 : i32
    %c0_i32 = arith.constant 0 : i32
    %c0_i32_0 = arith.constant 0 : i32
    return %1, %c0_i32 : i32, i32
  }
  func.func @transform_5(%arg0: i32, %arg1: i32) -> (i32, i32) {
    %c0_i32 = arith.constant 0 : i32
    %c0_i32_0 = arith.constant 0 : i32
    return %arg0, %c0_i32 : i32, i32
  }
}

</mosaic_0001>

<bundles_post_ra>
// kernel: basic_block_1d.5
= control target key start
LH: loop header
LB: loop body
LE: loop exit
PB: predicated region body
PF: predicated region fallthrough
CT: control target
= control target key end

     0   :  { %s422_s2 = inlined_call_operand.vmem [shape: f32[128,128], index: 2, kind: input, shape index: {}]   ;;  %s423_s3 = inlined_call_operand.vmem [shape: f32[1,128], index: 3, kind: input, shape index: {}]   ;;  %s424_s4 = inlined_call_operand.vmem [shape: f32[1,128], index: 4, kind: input, shape index: {}]   ;;  %s425_s0 = inlined_call_operand.vmem [shape: f32[64,128], index: 0, kind: input, shape index: {}]   ;;  %s426_s5 = inlined_call_operand.vmem [shape: f32[1,128], index: 5, kind: input, shape index: {}]   ;;  %s427_s6 = inlined_call_operand.vmem [shape: f32[1,128], index: 6, kind: input, shape index: {}]   ;;  %s428_s1 = inlined_call_operand.vmem [shape: f32[64,128], index: 1, kind: input, shape index: {}]   ;;  %s429_s7 = inlined_call_operand.vmem [shape: f32[64,128], index: 7, kind: output, shape index: {}]  }
   0x1   :  { %v81_v0 = vld [vmem:[%s422_s2 + $0x78] sm:$0xff]  ;;  %v80_v1 = vld [vmem:[%s422_s2 + $0x70] sm:$0xff]  ;;  %v79_v2 = vld [vmem:[%s422_s2 + $0x68] sm:$0xff] }
   0x2   :  { %176 = vmatpush.msra.mxu2 %v81_v0  ;;  %177 = vmatpush.msra.mxu3 %v81_v0  ;;  %v78_v3 = vld [vmem:[%s422_s2 + $0x60] sm:$0xff]  ;;  %v77_v4 = vld [vmem:[%s422_s2 + $0x58] sm:$0xff]  ;;  %v76_v5 = vld [vmem:[%s422_s2 + $0x50] sm:$0xff] }
   0x3   :  { %82 = vmatpush.msra.mxu0 %v81_v0  ;;  %175 = vmatpush.msra.mxu1 %v81_v0  ;;  %v75_v6 = vld [vmem:[%s422_s2 + $0x48] sm:$0xff]  ;;  %v26_v7 = vld [vmem:[%s425_s0] sm:$0xff]  ;;  %v73_v12 = vld [vmem:[%s422_s2 + $0x38] sm:$0xff] }
   0x4   :  { %179 = vmatpush.msra.mxu2 %v80_v1  ;;  %180 = vmatpush.msra.mxu3 %v80_v1  ;;  %v294_v8 = vld [vmem:[%s423_s3] ss:$0 sm:$0xff]  ;;  %v72_v14 = vld [vmem:[%s422_s2 + $0x30] sm:$0xff]  ;;  %v71_v15 = vld [vmem:[%s422_s2 + $0x28] sm:$0xff] }
   0x5   :  { %83 = vmatpush.msra.mxu0 %v80_v1  ;;  %178 = vmatpush.msra.mxu1 %v80_v1  ;;  %v299_v9 = vld [vmem:[%s424_s4] ss:$0 sm:$0xff]  ;;  %v38_v11 = vmul.f32 %v294_v8, %v26_v7  ;;  %v69_v17 = vld [vmem:[%s422_s2 + $0x18] sm:$0xff]  ;;  %v68_v18 = vld [vmem:[%s422_s2 + $0x10] sm:$0xff] }
   0x6   :  { %182 = vmatpush.msra.mxu2 %v79_v2  ;;  %183 = vmatpush.msra.mxu3 %v79_v2  ;;  %v74_v10 = vld [vmem:[%s422_s2 + $0x40] sm:$0xff]  ;;  %v67_v19 = vld [vmem:[%s422_s2 + $0x8] sm:$0xff]  ;;  %v64_v22 = vld [vmem:[%s428_s1 + $0x30] sm:$0xff] }
   0x7   :  { %84 = vmatpush.msra.mxu0 %v79_v2  ;;  %181 = vmatpush.msra.mxu1 %v79_v2  ;;  %v309_v13 = vadd.f32 %v299_v9, %v38_v11  ;;  %v70_v16 = vld [vmem:[%s422_s2 + $0x20] sm:$0xff]  ;;  %v60_v24 = vld [vmem:[%s428_s1 + $0x10] sm:$0xff]  ;;  %v63_v25 = vld [vmem:[%s428_s1 + $0x28] sm:$0xff] }
   0x8   :  { %185 = vmatpush.msra.mxu2 %v78_v3  ;;  %186 = vmatpush.msra.mxu3 %v78_v3  ;;  %v66_v20 = vld [vmem:[%s422_s2] sm:$0xff]  ;;  %v65_v26 = vld [vmem:[%s428_s1 + $0x38] sm:$0xff]  ;;  %v59_v27 = vld [vmem:[%s428_s1 + $0x8] sm:$0xff] }
   0x9   :  { %85 = vmatpush.msra.mxu0 %v78_v3  ;;  %184 = vmatpush.msra.mxu1 %v78_v3  ;;  %v62_v21 = vld [vmem:[%s428_s1 + $0x20] sm:$0xff]  ;;  %v61_v28 = vld [vmem:[%s428_s1 + $0x18] sm:$0xff]  ;;  %v28_v29 = vld [vmem:[%s425_s0 + $0x10] sm:$0xff] }
   0xa   :  { %188 = vmatpush.msra.mxu2 %v77_v4  ;;  %189 = vmatpush.msra.mxu3 %v77_v4  ;;  %v58_v23 = vld [vmem:[%s428_s1] sm:$0xff]  ;;  %v32_v31 = vld [vmem:[%s425_s0 + $0x30] sm:$0xff]  ;;  %v40_v32 = vmul.f32 %v294_v8, %v28_v29  ;;  %v27_v38 = vld [vmem:[%s425_s0 + $0x8] sm:$0xff] }
   0xb   :  { %86 = vmatpush.msra.mxu0 %v77_v4  ;;  %187 = vmatpush.msra.mxu1 %v77_v4  ;;  %v30_v30 = vld [vmem:[%s425_s0 + $0x20] sm:$0xff]  ;;  %v44_v34 = vmul.f32 %v294_v8, %v32_v31  ;;  %v29_v39 = vld [vmem:[%s425_s0 + $0x18] sm:$0xff]  ;;  %v31_v40 = vld [vmem:[%s425_s0 + $0x28] sm:$0xff]  ;;  %v39_v41 = vmul.f32 %v294_v8, %v27_v38 }
   0xc   :  { %191 = vmatpush.msra.mxu2 %v76_v5  ;;  %192 = vmatpush.msra.mxu3 %v76_v5  ;;  %v42_v33 = vmul.f32 %v294_v8, %v30_v30  ;;  %v52_v35 = vadd.f32 %v299_v9, %v40_v32  ;;  %v41_v42 = vmul.f32 %v294_v8, %v29_v39  ;;  %v33_v44 = vld [vmem:[%s425_s0 + $0x38] sm:$0xff]  ;;  %v225_v50 = vld [vmem:[%s426_s5] ss:$0 sm:$0xff] }
   0xd   :  { %87 = vmatpush.msra.mxu0 %v76_v5  ;;  %190 = vmatpush.msra.mxu1 %v76_v5  ;;  %v56_v37 = vadd.f32 %v299_v9, %v44_v34  ;;  %v43_v43 = vmul.f32 %v294_v8, %v31_v40  ;;  %v45_v45 = vmul.f32 %v294_v8, %v33_v44  ;;  %v226_v51 = vld [vmem:[%s427_s6] ss:$0 sm:$0xff] }
   0xe   :  { %194 = vmatpush.msra.mxu2 %v75_v6  ;;  %195 = vmatpush.msra.mxu3 %v75_v6  ;;  %v54_v36 = vadd.f32 %v299_v9, %v42_v33  ;;  %v51_v46 = vadd.f32 %v299_v9, %v39_v41  ;;  %v53_v47 = vadd.f32 %v299_v9, %v41_v42 }
   0xf   :  { %88 = vmatpush.msra.mxu0 %v75_v6  ;;  %193 = vmatpush.msra.mxu1 %v75_v6  ;;  %v55_v48 = vadd.f32 %v299_v9, %v43_v43  ;;  %v57_v49 = vadd.f32 %v299_v9, %v45_v45 }
  0x10   :  { %197 = vmatpush.msra.mxu2 %v74_v10  ;;  %198 = vmatpush.msra.mxu3 %v74_v10 }
  0x11   :  { %89 = vmatpush.msra.mxu0 %v74_v10  ;;  %196 = vmatpush.msra.mxu1 %v74_v10 }
  0x12   :  { %200 = vmatpush.msra.mxu2 %v73_v12  ;;  %201 = vmatpush.msra.mxu3 %v73_v12 }
  0x13   :  { %90 = vmatpush.msra.mxu0 %v73_v12  ;;  %199 = vmatpush.msra.mxu1 %v73_v12 }
  0x14   :  { %203 = vmatpush.msra.mxu2 %v72_v14  ;;  %204 = vmatpush.msra.mxu3 %v72_v14 }
  0x15   :  { %91 = vmatpush.msra.mxu0 %v72_v14  ;;  %202 = vmatpush.msra.mxu1 %v72_v14 }
  0x16   :  { %206 = vmatpush.msra.mxu2 %v71_v15  ;;  %207 = vmatpush.msra.mxu3 %v71_v15 }
  0x17   :  { %92 = vmatpush.msra.mxu0 %v71_v15  ;;  %205 = vmatpush.msra.mxu1 %v71_v15 }
  0x18   :  { %209 = vmatpush.msra.mxu2 %v70_v16  ;;  %210 = vmatpush.msra.mxu3 %v70_v16 }
  0x19   :  { %93 = vmatpush.msra.mxu0 %v70_v16  ;;  %208 = vmatpush.msra.mxu1 %v70_v16 }
  0x1a   :  { %212 = vmatpush.msra.mxu2 %v69_v17  ;;  %213 = vmatpush.msra.mxu3 %v69_v17 }
  0x1b   :  { %94 = vmatpush.msra.mxu0 %v69_v17  ;;  %211 = vmatpush.msra.mxu1 %v69_v17 }
  0x1c   :  { %215 = vmatpush.msra.mxu2 %v68_v18  ;;  %216 = vmatpush.msra.mxu3 %v68_v18 }
  0x1d   :  { %95 = vmatpush.msra.mxu0 %v68_v18  ;;  %214 = vmatpush.msra.mxu1 %v68_v18 }
  0x1e   :  { %218 = vmatpush.msra.mxu2 %v67_v19  ;;  %219 = vmatpush.msra.mxu3 %v67_v19 }
  0x1f   :  { %96 = vmatpush.msra.mxu0 %v67_v19  ;;  %217 = vmatpush.msra.mxu1 %v67_v19 }
  0x20   :  { %221 = vmatpush.msra.mxu2 %v66_v20  ;;  %222 = vmatpush.msra.mxu3 %v66_v20 }
  0x21   :  { %110 = vmatmul.f32.vlgmr.msra.gmra.mxu2 %v62_v21  ;;  %116 = vmatmul.f32.vlgmr.msra.gmra.mxu3 %v64_v22 }
  0x22   :  { %97 = vmatpush.msra.mxu0 %v66_v20  ;;  %220 = vmatpush.msra.mxu1 %v66_v20 }
  0x23   :  { %98 = vmatmul.f32.vlgmr.msra.gmra.mxu0 %v58_v23  ;;  %104 = vmatmul.f32.vlgmr.msra.gmra.mxu1 %v60_v24 }
  0x29   :  { %113 = vmatmul.f32.gmra.mxu2 %v63_v25  ;;  %119 = vmatmul.f32.gmra.mxu3 %v65_v26 }
  0x2b   :  { %101 = vmatmul.f32.gmra.mxu0 %v59_v27  ;;  %107 = vmatmul.f32.gmra.mxu1 %v61_v28 }
  0xa0   :  { %v99_v52 = vpop.f32.mrf.mxu0  ;;  %v105_v53 = vpop.f32.mrf.mxu1 }
  0xa1   :  { %v127_v54 = vmul.f32 %v225_v50, %v99_v52  ;;  %v129_v55 = vmul.f32 %v225_v50, %v105_v53 }
  0xa3   :  { %v139_v56 = vadd.f32 %v226_v51, %v127_v54  ;;  %v141_v57 = vadd.f32 %v226_v51, %v129_v55 }
  0xa4   :  { %v111_v58 = vpop.f32.mrf.mxu2  ;;  %v117_v59 = vpop.f32.mrf.mxu3 }
  0xa5   :  { %v147_v60 = vadd.f32 %v139_v56, %v309_v13  ;;  %v149_v61 = vadd.f32 %v141_v57, %v52_v35  ;;  %v131_v62 = vmul.f32 %v225_v50, %v111_v58  ;;  %v133_v63 = vmul.f32 %v225_v50, %v117_v59 }
  0xa7   :  { %v155_v0 = vmax.f32 %v147_v60, 0.0  ;;  %v157_v1 = vmax.f32 %v149_v61, 0.0  ;;  %v143_v2 = vadd.f32 %v226_v51, %v131_v62  ;;  %v145_v3 = vadd.f32 %v226_v51, %v133_v63 }
  0xa8   :  { %v102_v4 = vpop.f32.mrf.mxu0  ;;  %v108_v5 = vpop.f32.mrf.mxu1 }
  0xa9   :  { %163 = vst [vmem:[%s429_s7] sm:$0xff] %v155_v0  ;;  %v151_v6 = vadd.f32 %v143_v2, %v54_v36  ;;  %v153_v7 = vadd.f32 %v145_v3, %v56_v37  ;;  %v128_v8 = vmul.f32 %v225_v50, %v102_v4  ;;  %v130_v9 = vmul.f32 %v225_v50, %v108_v5 }
  0xaa   :  { %165 = vst [vmem:[%s429_s7 + $0x10] sm:$0xff] %v157_v1 }
  0xab   :  { %v159_v10 = vmax.f32 %v151_v6, 0.0  ;;  %v161_v11 = vmax.f32 %v153_v7, 0.0  ;;  %v140_v12 = vadd.f32 %v226_v51, %v128_v8  ;;  %v142_v13 = vadd.f32 %v226_v51, %v130_v9 }
  0xac   :  { %v114_v14 = vpop.f32.mrf.mxu2  ;;  %v120_v15 = vpop.f32.mrf.mxu3 }
  0xad   :  { %167 = vst [vmem:[%s429_s7 + $0x20] sm:$0xff] %v159_v10  ;;  %v148_v16 = vadd.f32 %v140_v12, %v51_v46  ;;  %v150_v17 = vadd.f32 %v142_v13, %v53_v47  ;;  %v132_v18 = vmul.f32 %v225_v50, %v114_v14  ;;  %v134_v19 = vmul.f32 %v225_v50, %v120_v15 }
  0xae   :  { %169 = vst [vmem:[%s429_s7 + $0x30] sm:$0xff] %v161_v11 }
  0xaf   :  { %v156_v20 = vmax.f32 %v148_v16, 0.0  ;;  %v158_v21 = vmax.f32 %v150_v17, 0.0  ;;  %v144_v22 = vadd.f32 %v226_v51, %v132_v18  ;;  %v146_v23 = vadd.f32 %v226_v51, %v134_v19 }
  0xb1   :  { %164 = vst [vmem:[%s429_s7 + $0x8] sm:$0xff] %v156_v20  ;;  %v152_v24 = vadd.f32 %v144_v22, %v55_v48  ;;  %v154_v25 = vadd.f32 %v146_v23, %v57_v49 }
  0xb2   :  { %166 = vst [vmem:[%s429_s7 + $0x18] sm:$0xff] %v158_v21 }
  0xb3   :  { %v160_v26 = vmax.f32 %v152_v24, 0.0  ;;  %v162_v27 = vmax.f32 %v154_v25, 0.0 }
  0xb5   :  { %168 = vst [vmem:[%s429_s7 + $0x28] sm:$0xff] %v160_v26 }
  0xb6   :  { %170 = vst [vmem:[%s429_s7 + $0x38] sm:$0xff] %v162_v27 }

// kernel: basic_block_1d.4
= control target key start
LH: loop header
LB: loop body
LE: loop exit
PB: predicated region body
PF: predicated region fallthrough
CT: control target
= control target key end

     0   :  { %v64_v38 = vlaneseq  ;;  %v479_v59 = vmov 0.0   ;;  %s856_s1 = inlined_call_operand.vmem [shape: f32[384,128], index: 1, kind: input, shape index: {}]   ;;  %s857_s0 = inlined_call_operand.vmem [shape: f32[64,128], index: 0, kind: input, shape index: {}]   ;;  %s858_s2 = inlined_call_operand.vmem [shape: f32[1,128], index: 2, kind: input, shape index: {}]   ;;  %s859_s3 = inlined_call_operand.vmem [shape: f32[1,128], index: 3, kind: input, shape index: {}]   ;;  %s860_s4 = inlined_call_operand.vmem [shape: f32[64,128], index: 4, kind: output, shape index: {0}]   ;;  %s861_s5 = inlined_call_operand.vmem [shape: f32[8,128], index: 5, kind: output, shape index: {1}]  }
   0x1   :  { %v194_v0 = vld [vmem:[%s856_s1 + $0x178] sm:$0xff]  ;;  %v193_v1 = vld [vmem:[%s856_s1 + $0x170] sm:$0xff]  ;;  %v192_v5 = vld [vmem:[%s856_s1 + $0x168] sm:$0xff]  ;;  %v714_v60 = vrot.slane %v479_v59, 7  ;;  %362 = vst [vmem:[%s860_s4 + $0x10] sm:$0xff] %v479_v59 }
   0x2   :  { %v162_v2 = vld [vmem:[%s856_s1 + $0x78] sm:$0xff]  ;;  %311 = vmatpush.msra.mxu2 %v194_v0  ;;  %v161_v4 = vld [vmem:[%s856_s1 + $0x70] sm:$0xff]  ;;  %v160_v7 = vld [vmem:[%s856_s1 + $0x68] sm:$0xff]  ;;  %v683_v49 = vshrl.u32 %v64_v38, 7  ;;  %363 = vst [vmem:[%s860_s4 + $0x18] sm:$0xff] %v479_v59 }
   0x3   :  { %229 = vmatpush.msra.mxu0 %v162_v2  ;;  %v522_v3 = vld [vmem:[%s856_s1 + $0xf8] sm:$0xff]  ;;  %v534_v6 = vld [vmem:[%s856_s1 + $0xf0] sm:$0xff]  ;;  %444 = vmatpush.msra.mxu3 %v162_v2  ;;  %v542_v8 = vld [vmem:[%s856_s1 + $0xe8] sm:$0xff]  ;;  %366 = vst [vmem:[%s860_s4 + $0x30] sm:$0xff] %v479_v59 }
   0x4   :  { %270 = vmatpush.msra.mxu1 %v522_v3  ;;  %312 = vmatpush.msra.mxu2 %v193_v1  ;;  %v191_v9 = vld [vmem:[%s856_s1 + $0x160] sm:$0xff]  ;;  %v190_v12 = vld [vmem:[%s856_s1 + $0x158] sm:$0xff]  ;;  %v189_v15 = vld [vmem:[%s856_s1 + $0x150] sm:$0xff]  ;;  %vm220_vm0 = vcmp.lt.s32.totalorder %v683_v49, 7  ;;  %vm203_vm1 = vcmp.lt.s32.totalorder %v683_v49, 1  ;;  %367 = vst [vmem:[%s860_s4 + $0x38] sm:$0xff] %v479_v59 }
   0x5   :  { %230 = vmatpush.msra.mxu0 %v161_v4  ;;  %v159_v10 = vld [vmem:[%s856_s1 + $0x60] sm:$0xff]  ;;  %445 = vmatpush.msra.mxu3 %v161_v4  ;;  %v158_v13 = vld [vmem:[%s856_s1 + $0x58] sm:$0xff]  ;;  %v157_v16 = vld [vmem:[%s856_s1 + $0x50] sm:$0xff]  ;;  %59 = vst [vmem:[%s861_s5] sm:$0xff] %v479_v59 }
   0x6   :  { %271 = vmatpush.msra.mxu1 %v534_v6  ;;  %313 = vmatpush.msra.mxu2 %v192_v5  ;;  %v554_v11 = vld [vmem:[%s856_s1 + $0xe0] sm:$0xff]  ;;  %v566_v14 = vld [vmem:[%s856_s1 + $0xd8] sm:$0xff]  ;;  %v578_v17 = vld [vmem:[%s856_s1 + $0xd0] sm:$0xff] }
   0x7   :  { %231 = vmatpush.msra.mxu0 %v160_v7  ;;  %446 = vmatpush.msra.mxu3 %v160_v7  ;;  %v188_v18 = vld [vmem:[%s856_s1 + $0x148] sm:$0xff]  ;;  %v187_v21 = vld [vmem:[%s856_s1 + $0x140] sm:$0xff]  ;;  %v186_v23 = vld [vmem:[%s856_s1 + $0x138] sm:$0xff]  ;;  %v753_v7 = vrot.slane %v479_v59, 1 }
   0x8   :  { %272 = vmatpush.msra.mxu1 %v542_v8  ;;  %314 = vmatpush.msra.mxu2 %v191_v9  ;;  %v156_v19 = vld [vmem:[%s856_s1 + $0x48] sm:$0xff]  ;;  %v155_v22 = vld [vmem:[%s856_s1 + $0x40] sm:$0xff]  ;;  %v185_v25 = vld [vmem:[%s856_s1 + $0x130] sm:$0xff] }
   0x9   :  { %232 = vmatpush.msra.mxu0 %v159_v10  ;;  %447 = vmatpush.msra.mxu3 %v159_v10  ;;  %v590_v20 = vld [vmem:[%s856_s1 + $0xc8] sm:$0xff]  ;;  %v605_v24 = vld [vmem:[%s856_s1 + $0xc0] sm:$0xff]  ;;  %v154_v26 = vld [vmem:[%s856_s1 + $0x38] sm:$0xff] }
   0xa   :  { %273 = vmatpush.msra.mxu1 %v554_v11  ;;  %315 = vmatpush.msra.mxu2 %v190_v12  ;;  %v617_v27 = vld [vmem:[%s856_s1 + $0xb8] sm:$0xff]  ;;  %v83_v28 = vld [vmem:[%s857_s0] sm:$0xff]  ;;  %v84_v29 = vld [vmem:[%s857_s0 + $0x8] sm:$0xff] }
   0xb   :  { %233 = vmatpush.msra.mxu0 %v158_v13  ;;  %448 = vmatpush.msra.mxu3 %v158_v13  ;;  %v628_v30 = vld [vmem:[%s858_s2] ss:$0 sm:$0xff]  ;;  %v153_v31 = vld [vmem:[%s856_s1 + $0x30] sm:$0xff]  ;;  %v184_v36 = vld [vmem:[%s856_s1 + $0x128] sm:$0xff] }
   0xc   :  { %274 = vmatpush.msra.mxu1 %v566_v14  ;;  %316 = vmatpush.msra.mxu2 %v189_v15  ;;  %v637_v32 = vld [vmem:[%s859_s3] ss:$0 sm:$0xff]  ;;  %v642_v33 = vld [vmem:[%s856_s1 + $0xb0] sm:$0xff]  ;;  %v95_v34 = vmul.f32 %v628_v30, %v83_v28  ;;  %v96_v35 = vmul.f32 %v628_v30, %v84_v29  ;;  %v152_v37 = vld [vmem:[%s856_s1 + $0x28] sm:$0xff] }
   0xd   :  { %234 = vmatpush.msra.mxu0 %v157_v16  ;;  %449 = vmatpush.msra.mxu3 %v157_v16  ;;  %v656_v39 = vld [vmem:[%s856_s1 + $0xa8] sm:$0xff]  ;;  %v183_v42 = vld [vmem:[%s856_s1 + $0x120] sm:$0xff]  ;;  %v182_v47 = vld [vmem:[%s856_s1 + $0x118] sm:$0xff] }
   0xe   :  { %275 = vmatpush.msra.mxu1 %v578_v17  ;;  %317 = vmatpush.msra.mxu2 %v188_v18  ;;  %v107_v40 = vadd.f32 %v637_v32, %v95_v34  ;;  %v108_v41 = vadd.f32 %v637_v32, %v96_v35  ;;  %v151_v43 = vld [vmem:[%s856_s1 + $0x20] sm:$0xff]  ;;  %v150_v48 = vld [vmem:[%s856_s1 + $0x18] sm:$0xff]  ;;  %v181_v51 = vld [vmem:[%s856_s1 + $0x110] sm:$0xff] }
   0xf   :  { %235 = vmatpush.msra.mxu0 %v156_v19  ;;  %450 = vmatpush.msra.mxu3 %v156_v19  ;;  %v670_v44 = vld [vmem:[%s856_s1 + $0xa0] sm:$0xff]  ;;  %v688_v50 = vld [vmem:[%s856_s1 + $0x98] sm:$0xff]  ;;  %v149_v52 = vld [vmem:[%s856_s1 + $0x10] sm:$0xff] }
  0x10   :  { %276 = vmatpush.msra.mxu1 %v590_v20  ;;  %318 = vmatpush.msra.mxu2 %v187_v21  ;;  %v672_v45 = vmax.f32 %v107_v40, 0.0  ;;  %v674_v46 = vmax.f32 %v108_v41, 0.0  ;;  %v700_v53 = vld [vmem:[%s856_s1 + $0x90] sm:$0xff]  ;;  %v180_v56 = vld [vmem:[%s856_s1 + $0x108] sm:$0xff]  ;;  %v179_v63 = vld [vmem:[%s856_s1 + $0x100] sm:$0xff] }
  0x11   :  { %236 = vmatpush.msra.mxu0 %v155_v22  ;;  %451 = vmatpush.msra.mxu3 %v155_v22  ;;  %v148_v57 = vld [vmem:[%s856_s1 + $0x8] sm:$0xff]  ;;  %v147_v0 = vld [vmem:[%s856_s1] sm:$0xff] }
  0x12   :  { %277 = vmatpush.msra.mxu1 %v605_v24  ;;  %319 = vmatpush.msra.mxu2 %v186_v23  ;;  %v212_v54 = vrot.slane %v672_v45, 1  ;;  %v213_v55 = vrot.slane %v674_v46, 1  ;;  %v195_v58 = vrot.slane %v672_v45, 7  ;;  %v719_v61 = vld [vmem:[%s856_s1 + $0x88] sm:$0xff]  ;;  %v739_v2 = vld [vmem:[%s856_s1 + $0x80] sm:$0xff]  ;;  %v196_v9 = vrot.slane %v674_v46, 7 }
  0x13   :  { %237 = vmatpush.msra.mxu0 %v154_v26  ;;  %452 = vmatpush.msra.mxu3 %v154_v26  ;;  %v88_v62 = vld [vmem:[%s857_s0 + $0x28] sm:$0xff]  ;;  %v87_v10 = vld [vmem:[%s857_s0 + $0x20] sm:$0xff] }
  0x14   :  { %278 = vmatpush.msra.mxu1 %v617_v27  ;;  %320 = vmatpush.msra.mxu2 %v185_v25  ;;  %v227_v1 = vsel %vm220_vm0, %v212_v54, %v213_v55  ;;  %v211_v4 = vsel %vm203_vm1, %v714_v60, %v195_v58  ;;  %v100_v5 = vmul.f32 %v628_v30, %v88_v62 }
  0x15   :  { %238 = vmatpush.msra.mxu0 %v153_v31  ;;  %453 = vmatpush.msra.mxu3 %v153_v31  ;;  %v226_v13 = vsel %vm220_vm0, %v213_v55, %v753_v7  ;;  %v99_v15 = vmul.f32 %v628_v30, %v87_v10  ;;  %v210_v16 = vsel %vm203_vm1, %v195_v58, %v196_v9 }
  0x16   :  { %279 = vmatpush.msra.mxu1 %v642_v33  ;;  %321 = vmatpush.msra.mxu2 %v184_v36  ;;  %v112_v12 = vadd.f32 %v637_v32, %v100_v5  ;;  %v228_v26 = vsel %vm220_vm0, %v753_v7, %v212_v54 }
  0x17   :  { %239 = vmatpush.msra.mxu0 %v152_v37  ;;  %454 = vmatpush.msra.mxu3 %v152_v37  ;;  %v111_v19 = vadd.f32 %v637_v32, %v99_v15 }
  0x18   :  { %280 = vmatpush.msra.mxu1 %v656_v39  ;;  %322 = vmatpush.msra.mxu2 %v183_v42  ;;  %v120_v18 = vmax.f32 %v112_v12, 0.0 }
  0x19   :  { %240 = vmatpush.msra.mxu0 %v151_v43  ;;  %455 = vmatpush.msra.mxu3 %v151_v43 }
  0x1a   :  { %281 = vmatpush.msra.mxu1 %v670_v44  ;;  %323 = vmatpush.msra.mxu2 %v182_v47 }
  0x1b   :  { %241 = vmatpush.msra.mxu0 %v150_v48  ;;  %456 = vmatpush.msra.mxu3 %v150_v48 }
  0x1c   :  { %282 = vmatpush.msra.mxu1 %v688_v50  ;;  %324 = vmatpush.msra.mxu2 %v181_v51 }
  0x1d   :  { %242 = vmatpush.msra.mxu0 %v149_v52  ;;  %457 = vmatpush.msra.mxu3 %v149_v52 }
  0x1e   :  { %283 = vmatpush.msra.mxu1 %v700_v53  ;;  %325 = vmatpush.msra.mxu2 %v180_v56 }
  0x1f   :  { %243 = vmatpush.msra.mxu0 %v148_v57  ;;  %458 = vmatpush.msra.mxu3 %v148_v57 }
  0x20   :  { %284 = vmatpush.msra.mxu1 %v719_v61  ;;  %326 = vmatpush.msra.mxu2 %v179_v63 }
  0x21   :  { %244 = vmatpush.msra.mxu0 %v147_v0  ;;  %327 = vmatmul.f32.vlgmr.msra.gmra.mxu2 %v227_v1 }
  0x22   :  { %285 = vmatpush.msra.mxu1 %v739_v2  ;;  %245 = vmatmul.f32.vlgmr.msra.gmra.mxu0 %v211_v4 }
  0x23   :  { %286 = vmatmul.f32.vlgmr.msra.gmra.mxu1 %v672_v45  ;;  %459 = vmatpush.msra.mxu3 %v147_v0 }
  0x25   :  { %460 = vmatpush.msrb.mxu3 %v522_v3  ;;  %v200_v3 = vrot.slane %v120_v18, 7 }
  0x27   :  { %461 = vmatpush.msrb.mxu3 %v534_v6  ;;  %v205_v21 = vsel %vm203_vm1, %v200_v3, %v714_v60  ;;  %v119_v6 = vmax.f32 %v111_v19, 0.0 }
  0x28   :  { %263 = vmatmul.f32.vlgmr.msra.gmra.mxu3 %v205_v21 }
  0x29   :  { %462 = vmatpush.msrb.mxu3 %v542_v8  ;;  %330 = vmatmul.f32.gmra.mxu2 %v226_v13  ;;  %v209_v8 = vsel %vm203_vm1, %v196_v9, %v714_v60 }
  0x2a   :  { %248 = vmatmul.f32.gmra.mxu0 %v210_v16 }
  0x2b   :  { %289 = vmatmul.f32.gmra.mxu1 %v674_v46  ;;  %463 = vmatpush.msrb.mxu3 %v554_v11  ;;  %v216_v11 = vrot.slane %v119_v6, 1 }
  0x2d   :  { %464 = vmatpush.msrb.mxu3 %v566_v14  ;;  %v224_v14 = vsel %vm220_vm0, %v753_v7, %v216_v11 }
  0x2f   :  { %465 = vmatpush.msrb.mxu3 %v578_v17  ;;  %v217_v17 = vrot.slane %v120_v18, 1 }
  0x30   :  { %266 = vmatmul.f32.gmra.mxu3 %v714_v60 }
  0x31   :  { %333 = vmatmul.f32.gmra.mxu2 %v753_v7  ;;  %466 = vmatpush.msrb.mxu3 %v590_v20  ;;  %v199_v20 = vrot.slane %v119_v6, 7  ;;  %v223_v22 = vsel %vm220_vm0, %v216_v11, %v217_v17 }
  0x32   :  { %251 = vmatmul.f32.gmra.mxu0 %v209_v8 }
  0x33   :  { %292 = vmatmul.f32.gmra.mxu1 %v479_v59  ;;  %467 = vmatpush.msrb.mxu3 %v605_v24  ;;  %v207_v23 = vsel %vm203_vm1, %v714_v60, %v199_v20  ;;  %v222_v24 = vsel %vm220_vm0, %v217_v17, %v753_v7  ;;  %v206_v25 = vsel %vm203_vm1, %v199_v20, %v200_v3  ;;  %v368_v3 = vld [vmem:[%s861_s5] sm:$0x1] }
  0x35   :  { %468 = vmatpush.msrb.mxu3 %v617_v27 }
  0x37   :  { %469 = vmatpush.msrb.mxu3 %v642_v33 }
  0x39   :  { %336 = vmatmul.f32.gmra.mxu2 %v224_v14  ;;  %470 = vmatpush.msrb.mxu3 %v656_v39 }
  0x3a   :  { %254 = vmatmul.f32.gmra.mxu0 %v714_v60 }
  0x3b   :  { %295 = vmatmul.f32.gmra.mxu1 %v479_v59  ;;  %471 = vmatpush.msrb.mxu3 %v670_v44 }
  0x3d   :  { %472 = vmatpush.msrb.mxu3 %v688_v50 }
  0x3f   :  { %473 = vmatpush.msrb.mxu3 %v700_v53 }
  0x41   :  { %339 = vmatmul.f32.gmra.mxu2 %v223_v22  ;;  %474 = vmatpush.msrb.mxu3 %v719_v61 }
  0x42   :  { %257 = vmatmul.f32.gmra.mxu0 %v207_v23 }
  0x43   :  { %298 = vmatmul.f32.gmra.mxu1 %v119_v6  ;;  %475 = vmatpush.msrb.mxu3 %v739_v2  ;;  %v384_v6 = vld [vmem:[%s861_s5 + $0x1] sm:$0x1] }
  0x44   :  { %307 = vmatmul.f32.vlgmr.msrb.gmra.mxu3 %v479_v59 }
  0x49   :  { %342 = vmatmul.f32.gmra.mxu2 %v222_v24 }
  0x4a   :  { %260 = vmatmul.f32.gmra.mxu0 %v206_v25 }
  0x4b   :  { %301 = vmatmul.f32.gmra.mxu1 %v120_v18 }
  0x51   :  { %345 = vmatmul.f32.gmra.mxu2 %v753_v7 }
  0x53   :  { %304 = vmatmul.f32.gmra.mxu1 %v479_v59 }
  0x59   :  { %348 = vmatmul.f32.gmra.mxu2 %v228_v26 }
  0x9f   :  { %v246_v27 = vpop.f32.mrf.mxu0 }
  0xa0   :  { %v287_v28 = vpop.f32.mrf.mxu1 }
  0xa1   :  { %v288_v29 = vadd.f32 %v287_v28, %v246_v27 }
  0xa4   :  { %v328_v30 = vpop.f32.mrf.mxu2 }
  0xa5   :  { %v329_v31 = vadd.f32 %v328_v30, %v288_v29 }
  0xa7   :  { %360 = vst [vmem:[%s860_s4] sm:$0xff] %v329_v31  ;;  %v249_v32 = vpop.f32.mrf.mxu0  ;;  %v385_v55 = vmul.f32 %v329_v31, %v329_v31 }
  0xa8   :  { %v290_v33 = vpop.f32.mrf.mxu1 }
  0xa9   :  { %v291_v34 = vadd.f32 %v290_v33, %v249_v32 }
  0xab   :  { %v264_v39 = vpop.f32.mrf.mxu3 }
  0xac   :  { %v331_v35 = vpop.f32.mrf.mxu2 }
  0xad   :  { %v332_v36 = vadd.f32 %v331_v35, %v291_v34 }
  0xaf   :  { %361 = vst [vmem:[%s860_s4 + $0x8] sm:$0xff] %v332_v36  ;;  %v252_v37 = vpop.f32.mrf.mxu0  ;;  %v386_v53 = vmul.f32 %v332_v36, %v332_v36  ;;  %v369_v56 = vadd.f32 %v332_v36, %v329_v31 }
  0xb0   :  { %v293_v38 = vpop.f32.mrf.mxu1 }
  0xb1   :  { %v393_v59 = vadd.f32 %v386_v53, %v385_v55 }
  0xb3   :  { %v267_v43 = vpop.f32.mrf.mxu3 }
  0xb4   :  { %v334_v40 = vpop.f32.mrf.mxu2 }
  0xb7   :  { %v255_v41 = vpop.f32.mrf.mxu0 }
  0xb8   :  { %v296_v42 = vpop.f32.mrf.mxu1 }
  0xbc   :  { %v337_v44 = vpop.f32.mrf.mxu2 }
  0xbf   :  { %v258_v45 = vpop.f32.mrf.mxu0 }
  0xc0   :  { %v299_v46 = vpop.f32.mrf.mxu1 }
  0xc1   :  { %v300_v47 = vadd.f32 %v299_v46, %v258_v45 }
  0xc4   :  { %v340_v48 = vpop.f32.mrf.mxu2 }
  0xc5   :  { %v341_v49 = vadd.f32 %v340_v48, %v300_v47 }
  0xc7   :  { %364 = vst [vmem:[%s860_s4 + $0x20] sm:$0xff] %v341_v49  ;;  %v261_v50 = vpop.f32.mrf.mxu0  ;;  %v308_v52 = vpop.f32.mrf.mxu3  ;;  %v389_v57 = vmul.f32 %v341_v49, %v341_v49  ;;  %v372_v60 = vadd.f32 %v369_v56, %v341_v49 }
  0xc8   :  { %v302_v51 = vpop.f32.mrf.mxu1 }
  0xc9   :  { %v303_v54 = vadd.f32 %v302_v51, %v261_v50  ;;  %v396_v62 = vadd.f32 %v393_v59, %v389_v57 }
  0xcc   :  { %v343_v58 = vpop.f32.mrf.mxu2 }
  0xcd   :  { %v344_v61 = vadd.f32 %v343_v58, %v303_v54 }
  0xcf   :  { %365 = vst [vmem:[%s860_s4 + $0x28] sm:$0xff] %v344_v61  ;;  %v373_v63 = vadd.f32 %v372_v60, %v344_v61  ;;  %v390_v0 = vmul.f32 %v344_v61, %v344_v61 }
  0xd0   :  { %v305_v1 = vpop.f32.mrf.mxu1 }
  0xd1   :  { %v376_v2 = vrot.slane %v373_v63, 4  ;;  %v397_v4 = vadd.f32 %v396_v62, %v390_v0 }
  0xd3   :  { %v377_v5 = vadd.f32 %v376_v2, %v373_v63  ;;  %v400_v7 = vrot.slane %v397_v4, 4 }
  0xd4   :  { %v346_v9 = vpop.f32.mrf.mxu2 }
  0xd5   :  { %v378_v10 = vrot.slane %v377_v5, 2  ;;  %v401_v12 = vadd.f32 %v400_v7, %v397_v4 }
  0xd7   :  { %v379_v13 = vadd.f32 %v378_v10, %v377_v5  ;;  %v402_v15 = vrot.slane %v401_v12, 2 }
  0xd9   :  { %v380_v16 = vrot.slane %v379_v13, 1  ;;  %v403_v18 = vadd.f32 %v402_v15, %v401_v12 }
  0xdb   :  { %v381_v19 = vadd.f32 %v380_v16, %v379_v13  ;;  %v404_v21 = vrot.slane %v403_v18, 1 }
  0xdc   :  { %v349_v8 = vpop.f32.mrf.mxu2 }
  0xdd   :  { %v382_v11 = vadd.f32 %v381_v19, %v368_v3  ;;  %v405_v14 = vadd.f32 %v404_v21, %v403_v18 }
  0xdf   :  { %383 = vst [vmem:[%s861_s5] sm:$0x1] %v382_v11  ;;  %v406_v17 = vadd.f32 %v405_v14, %v384_v6 }
  0xe1   :  { %407 = vst [vmem:[%s861_s5 + $0x1] sm:$0x1] %v406_v17 }

// kernel: basic_block_1d.3
= control target key start
LH: loop header
LB: loop body
LE: loop exit
PB: predicated region body
PF: predicated region fallthrough
CT: control target
= control target key end

     0   :  { %v61_v42 = vlaneseq  ;;  %s854_s1 = inlined_call_operand.vmem [shape: f32[384,128], index: 1, kind: input, shape index: {}]   ;;  %s855_s2 = inlined_call_operand.vmem [shape: f32[128,128], index: 2, kind: input, shape index: {}]   ;;  %s856_s0 = inlined_call_operand.vmem [shape: f32[64,128], index: 0, kind: input, shape index: {}]   ;;  %s857_s3 = inlined_call_operand.vmem [shape: f32[64,128], index: 3, kind: output, shape index: {0}]   ;;  %s858_s4 = inlined_call_operand.vmem [shape: f32[8,128], index: 4, kind: output, shape index: {1}]  }
   0x1   :  { %v135_v0 = vld [vmem:[%s854_s1 + $0x178] sm:$0xff]  ;;  %v134_v2 = vld [vmem:[%s854_s1 + $0x170] sm:$0xff]  ;;  %v133_v6 = vld [vmem:[%s854_s1 + $0x168] sm:$0xff] }
   0x2   :  { %v380_v1 = vld [vmem:[%s855_s2 + $0x78] sm:$0xff]  ;;  %252 = vmatpush.msra.mxu2 %v135_v0  ;;  %v379_v3 = vld [vmem:[%s855_s2 + $0x70] sm:$0xff]  ;;  %v378_v7 = vld [vmem:[%s855_s2 + $0x68] sm:$0xff]  ;;  %v675_v51 = vshrl.u32 %v61_v42, 7  ;;  %v499_v42 = vmov 0.0  }
   0x3   :  { %381 = vmatpush.msra.mxu3 %v380_v1  ;;  %v103_v4 = vld [vmem:[%s854_s1 + $0x78] sm:$0xff]  ;;  %v102_v8 = vld [vmem:[%s854_s1 + $0x70] sm:$0xff]  ;;  %v132_v10 = vld [vmem:[%s854_s1 + $0x160] sm:$0xff]  ;;  %319 = vst [vmem:[%s857_s3 + $0x10] sm:$0xff] %v499_v42 }
   0x4   :  { %v119_v5 = vld [vmem:[%s854_s1 + $0xf8] sm:$0xff]  ;;  %170 = vmatpush.msra.mxu0 %v103_v4  ;;  %253 = vmatpush.msra.mxu2 %v134_v2  ;;  %v118_v9 = vld [vmem:[%s854_s1 + $0xf0] sm:$0xff]  ;;  %v377_v11 = vld [vmem:[%s855_s2 + $0x60] sm:$0xff]  ;;  %vm161_vm0 = vcmp.lt.s32.totalorder %v675_v51, 7  ;;  %vm144_vm1 = vcmp.lt.s32.totalorder %v675_v51, 1  ;;  %320 = vst [vmem:[%s857_s3 + $0x18] sm:$0xff] %v499_v42 }
   0x5   :  { %211 = vmatpush.msra.mxu1 %v119_v5  ;;  %382 = vmatpush.msra.mxu3 %v379_v3  ;;  %v101_v12 = vld [vmem:[%s854_s1 + $0x68] sm:$0xff]  ;;  %v100_v14 = vld [vmem:[%s854_s1 + $0x60] sm:$0xff]  ;;  %v131_v16 = vld [vmem:[%s854_s1 + $0x158] sm:$0xff]  ;;  %323 = vst [vmem:[%s857_s3 + $0x30] sm:$0xff] %v499_v42 }
   0x6   :  { %171 = vmatpush.msra.mxu0 %v102_v8  ;;  %v117_v13 = vld [vmem:[%s854_s1 + $0xe8] sm:$0xff]  ;;  %254 = vmatpush.msra.mxu2 %v133_v6  ;;  %v116_v15 = vld [vmem:[%s854_s1 + $0xe0] sm:$0xff]  ;;  %v376_v17 = vld [vmem:[%s855_s2 + $0x58] sm:$0xff]  ;;  %324 = vst [vmem:[%s857_s3 + $0x38] sm:$0xff] %v499_v42 }
   0x7   :  { %212 = vmatpush.msra.mxu1 %v118_v9  ;;  %383 = vmatpush.msra.mxu3 %v378_v7  ;;  %v99_v18 = vld [vmem:[%s854_s1 + $0x58] sm:$0xff]  ;;  %v130_v20 = vld [vmem:[%s854_s1 + $0x150] sm:$0xff]  ;;  %v129_v24 = vld [vmem:[%s854_s1 + $0x148] sm:$0xff]  ;;  %56 = vst [vmem:[%s858_s4] sm:$0xff] %v499_v42 }
   0x8   :  { %172 = vmatpush.msra.mxu0 %v101_v12  ;;  %255 = vmatpush.msra.mxu2 %v132_v10  ;;  %v115_v19 = vld [vmem:[%s854_s1 + $0xd8] sm:$0xff]  ;;  %v375_v21 = vld [vmem:[%s855_s2 + $0x50] sm:$0xff]  ;;  %v374_v25 = vld [vmem:[%s855_s2 + $0x48] sm:$0xff] }
   0x9   :  { %213 = vmatpush.msra.mxu1 %v117_v13  ;;  %384 = vmatpush.msra.mxu3 %v377_v11  ;;  %v98_v22 = vld [vmem:[%s854_s1 + $0x50] sm:$0xff]  ;;  %v97_v26 = vld [vmem:[%s854_s1 + $0x48] sm:$0xff]  ;;  %v128_v28 = vld [vmem:[%s854_s1 + $0x140] sm:$0xff] }
   0xa   :  { %173 = vmatpush.msra.mxu0 %v100_v14  ;;  %256 = vmatpush.msra.mxu2 %v131_v16  ;;  %v114_v23 = vld [vmem:[%s854_s1 + $0xd0] sm:$0xff]  ;;  %v113_v27 = vld [vmem:[%s854_s1 + $0xc8] sm:$0xff]  ;;  %v373_v29 = vld [vmem:[%s855_s2 + $0x40] sm:$0xff] }
   0xb   :  { %214 = vmatpush.msra.mxu1 %v116_v15  ;;  %385 = vmatpush.msra.mxu3 %v376_v17  ;;  %v96_v30 = vld [vmem:[%s854_s1 + $0x40] sm:$0xff]  ;;  %v127_v32 = vld [vmem:[%s854_s1 + $0x138] sm:$0xff]  ;;  %v126_v36 = vld [vmem:[%s854_s1 + $0x130] sm:$0xff] }
   0xc   :  { %174 = vmatpush.msra.mxu0 %v99_v18  ;;  %257 = vmatpush.msra.mxu2 %v130_v20  ;;  %v112_v31 = vld [vmem:[%s854_s1 + $0xc0] sm:$0xff]  ;;  %v372_v33 = vld [vmem:[%s855_s2 + $0x38] sm:$0xff]  ;;  %v371_v37 = vld [vmem:[%s855_s2 + $0x30] sm:$0xff] }
   0xd   :  { %215 = vmatpush.msra.mxu1 %v115_v19  ;;  %386 = vmatpush.msra.mxu3 %v375_v21  ;;  %v95_v34 = vld [vmem:[%s854_s1 + $0x38] sm:$0xff]  ;;  %v94_v38 = vld [vmem:[%s854_s1 + $0x30] sm:$0xff]  ;;  %v125_v40 = vld [vmem:[%s854_s1 + $0x128] sm:$0xff] }
   0xe   :  { %175 = vmatpush.msra.mxu0 %v98_v22  ;;  %258 = vmatpush.msra.mxu2 %v129_v24  ;;  %v111_v35 = vld [vmem:[%s854_s1 + $0xb8] sm:$0xff]  ;;  %v110_v39 = vld [vmem:[%s854_s1 + $0xb0] sm:$0xff]  ;;  %v370_v41 = vld [vmem:[%s855_s2 + $0x28] sm:$0xff] }
   0xf   :  { %216 = vmatpush.msra.mxu1 %v114_v23  ;;  %387 = vmatpush.msra.mxu3 %v374_v25  ;;  %v93_v43 = vld [vmem:[%s854_s1 + $0x28] sm:$0xff]  ;;  %v124_v45 = vld [vmem:[%s854_s1 + $0x120] sm:$0xff]  ;;  %v123_v47 = vld [vmem:[%s854_s1 + $0x118] sm:$0xff] }
  0x10   :  { %176 = vmatpush.msra.mxu0 %v97_v26  ;;  %259 = vmatpush.msra.mxu2 %v128_v28  ;;  %v109_v44 = vld [vmem:[%s854_s1 + $0xa8] sm:$0xff]  ;;  %v369_v46 = vld [vmem:[%s855_s2 + $0x20] sm:$0xff]  ;;  %v368_v50 = vld [vmem:[%s855_s2 + $0x18] sm:$0xff] }
  0x11   :  { %217 = vmatpush.msra.mxu1 %v113_v27  ;;  %388 = vmatpush.msra.mxu3 %v373_v29  ;;  %v92_v48 = vld [vmem:[%s854_s1 + $0x20] sm:$0xff]  ;;  %v685_v53 = vld [vmem:[%s856_s0 + $0x8] sm:$0xff]  ;;  %v91_v54 = vld [vmem:[%s854_s1 + $0x18] sm:$0xff] }
  0x12   :  { %177 = vmatpush.msra.mxu0 %v96_v30  ;;  %260 = vmatpush.msra.mxu2 %v127_v32  ;;  %v108_v49 = vld [vmem:[%s854_s1 + $0xa0] sm:$0xff]  ;;  %v107_v55 = vld [vmem:[%s854_s1 + $0x98] sm:$0xff]  ;;  %v122_v56 = vld [vmem:[%s854_s1 + $0x110] sm:$0xff]  ;;  %v154_v62 = vrot.slane %v685_v53, 1  ;;  %v137_v13 = vrot.slane %v685_v53, 7 }
  0x13   :  { %218 = vmatpush.msra.mxu1 %v112_v31  ;;  %389 = vmatpush.msra.mxu3 %v372_v33  ;;  %v680_v52 = vld [vmem:[%s856_s0] sm:$0xff]  ;;  %v367_v57 = vld [vmem:[%s855_s2 + $0x10] sm:$0xff]  ;;  %v702_v58 = vld [vmem:[%s856_s0 + $0x38] sm:$0xff] }
  0x14   :  { %178 = vmatpush.msra.mxu0 %v95_v34  ;;  %261 = vmatpush.msra.mxu2 %v126_v36  ;;  %v90_v59 = vld [vmem:[%s854_s1 + $0x10] sm:$0xff]  ;;  %v153_v61 = vrot.slane %v680_v52, 1  ;;  %v121_v63 = vld [vmem:[%s854_s1 + $0x108] sm:$0xff]  ;;  %v136_v3 = vrot.slane %v680_v52, 7  ;;  %v143_v4 = vrot.slane %v702_v58, 7  ;;  %v120_v5 = vld [vmem:[%s854_s1 + $0x100] sm:$0xff] }
  0x15   :  { %219 = vmatpush.msra.mxu1 %v111_v35  ;;  %390 = vmatpush.msra.mxu3 %v371_v37  ;;  %v106_v60 = vld [vmem:[%s854_s1 + $0x90] sm:$0xff]  ;;  %v366_v0 = vld [vmem:[%s855_s2 + $0x8] sm:$0xff]  ;;  %v365_v6 = vld [vmem:[%s855_s2] sm:$0xff]  ;;  %v160_v36 = vrot.slane %v702_v58, 1 }
  0x16   :  { %179 = vmatpush.msra.mxu0 %v94_v38  ;;  %262 = vmatpush.msra.mxu2 %v125_v40  ;;  %v89_v1 = vld [vmem:[%s854_s1 + $0x8] sm:$0xff]  ;;  %v168_v7 = vsel %vm161_vm0, %v153_v61, %v154_v62  ;;  %v88_v8 = vld [vmem:[%s854_s1] sm:$0xff]  ;;  %v82_v10 = vld [vmem:[%s856_s0 + $0x10] sm:$0xff]  ;;  %v152_v11 = vsel %vm144_vm1, %v143_v4, %v136_v3  ;;  %v151_v16 = vsel %vm144_vm1, %v136_v3, %v137_v13 }
  0x17   :  { %220 = vmatpush.msra.mxu1 %v110_v39  ;;  %391 = vmatpush.msra.mxu3 %v370_v41  ;;  %v105_v2 = vld [vmem:[%s854_s1 + $0x88] sm:$0xff]  ;;  %v104_v9 = vld [vmem:[%s854_s1 + $0x80] sm:$0xff]  ;;  %v155_v12 = vrot.slane %v82_v10, 1  ;;  %v83_v15 = vld [vmem:[%s856_s0 + $0x18] sm:$0xff]  ;;  %v138_v18 = vrot.slane %v82_v10, 7  ;;  %v169_v40 = vsel %vm161_vm0, %v160_v36, %v153_v61 }
  0x18   :  { %180 = vmatpush.msra.mxu0 %v93_v43  ;;  %263 = vmatpush.msra.mxu2 %v124_v45  ;;  %v156_v17 = vrot.slane %v83_v15, 1  ;;  %v84_v20 = vld [vmem:[%s856_s0 + $0x20] sm:$0xff]  ;;  %v139_v23 = vrot.slane %v83_v15, 7  ;;  %v85_v25 = vld [vmem:[%s856_s0 + $0x28] sm:$0xff]  ;;  %v86_v30 = vld [vmem:[%s856_s0 + $0x30] sm:$0xff] }
  0x19   :  { %221 = vmatpush.msra.mxu1 %v109_v44  ;;  %392 = vmatpush.msra.mxu3 %v369_v46  ;;  %v167_v14 = vsel %vm161_vm0, %v154_v62, %v155_v12  ;;  %v150_v21 = vsel %vm144_vm1, %v137_v13, %v138_v18  ;;  %v157_v22 = vrot.slane %v84_v20, 1  ;;  %v158_v27 = vrot.slane %v85_v25, 1 }
  0x1a   :  { %181 = vmatpush.msra.mxu0 %v92_v48  ;;  %264 = vmatpush.msra.mxu2 %v123_v47  ;;  %v166_v19 = vsel %vm161_vm0, %v155_v12, %v156_v17  ;;  %v149_v26 = vsel %vm144_vm1, %v138_v18, %v139_v23  ;;  %v140_v28 = vrot.slane %v84_v20, 7  ;;  %v159_v32 = vrot.slane %v86_v30, 1 }
  0x1b   :  { %222 = vmatpush.msra.mxu1 %v108_v49  ;;  %393 = vmatpush.msra.mxu3 %v368_v50  ;;  %v165_v24 = vsel %vm161_vm0, %v156_v17, %v157_v22  ;;  %v164_v29 = vsel %vm161_vm0, %v157_v22, %v158_v27  ;;  %v141_v33 = vrot.slane %v85_v25, 7  ;;  %v142_v37 = vrot.slane %v86_v30, 7 }
  0x1c   :  { %182 = vmatpush.msra.mxu0 %v91_v54  ;;  %265 = vmatpush.msra.mxu2 %v122_v56  ;;  %v148_v31 = vsel %vm144_vm1, %v139_v23, %v140_v28  ;;  %v163_v34 = vsel %vm161_vm0, %v158_v27, %v159_v32  ;;  %v162_v38 = vsel %vm161_vm0, %v159_v32, %v160_v36 }
  0x1d   :  { %223 = vmatpush.msra.mxu1 %v107_v55  ;;  %394 = vmatpush.msra.mxu3 %v367_v57  ;;  %v147_v35 = vsel %vm144_vm1, %v140_v28, %v141_v33  ;;  %v146_v39 = vsel %vm144_vm1, %v141_v33, %v142_v37  ;;  %v145_v41 = vsel %vm144_vm1, %v142_v37, %v143_v4 }
  0x1e   :  { %183 = vmatpush.msra.mxu0 %v90_v59  ;;  %266 = vmatpush.msra.mxu2 %v121_v63 }
  0x1f   :  { %224 = vmatpush.msra.mxu1 %v106_v60  ;;  %395 = vmatpush.msra.mxu3 %v366_v0 }
  0x20   :  { %184 = vmatpush.msra.mxu0 %v89_v1  ;;  %267 = vmatpush.msra.mxu2 %v120_v5 }
  0x21   :  { %225 = vmatpush.msra.mxu1 %v105_v2  ;;  %396 = vmatpush.msra.mxu3 %v365_v6 }
  0x22   :  { %268 = vmatmul.f32.vlgmr.msra.gmra.mxu2 %v168_v7  ;;  %397 = vmatmul.f32.vlgmr.msra.gmra.mxu3 %v680_v52 }
  0x23   :  { %185 = vmatpush.msra.mxu0 %v88_v8  ;;  %226 = vmatpush.msra.mxu1 %v104_v9 }
  0x24   :  { %186 = vmatmul.f32.vlgmr.msra.gmra.mxu0 %v152_v11  ;;  %227 = vmatmul.f32.vlgmr.msra.gmra.mxu1 %v680_v52 }
  0x2a   :  { %271 = vmatmul.f32.gmra.mxu2 %v167_v14  ;;  %400 = vmatmul.f32.gmra.mxu3 %v685_v53 }
  0x2c   :  { %189 = vmatmul.f32.gmra.mxu0 %v151_v16  ;;  %230 = vmatmul.f32.gmra.mxu1 %v685_v53 }
  0x32   :  { %274 = vmatmul.f32.gmra.mxu2 %v166_v19  ;;  %403 = vmatmul.f32.gmra.mxu3 %v82_v10 }
  0x34   :  { %192 = vmatmul.f32.gmra.mxu0 %v150_v21  ;;  %233 = vmatmul.f32.gmra.mxu1 %v82_v10 }
  0x3a   :  { %277 = vmatmul.f32.gmra.mxu2 %v165_v24  ;;  %406 = vmatmul.f32.gmra.mxu3 %v83_v15 }
  0x3c   :  { %195 = vmatmul.f32.gmra.mxu0 %v149_v26  ;;  %236 = vmatmul.f32.gmra.mxu1 %v83_v15 }
  0x42   :  { %280 = vmatmul.f32.gmra.mxu2 %v164_v29  ;;  %409 = vmatmul.f32.gmra.mxu3 %v84_v20 }
  0x44   :  { %198 = vmatmul.f32.gmra.mxu0 %v148_v31  ;;  %239 = vmatmul.f32.gmra.mxu1 %v84_v20 }
  0x4a   :  { %283 = vmatmul.f32.gmra.mxu2 %v163_v34  ;;  %412 = vmatmul.f32.gmra.mxu3 %v85_v25 }
  0x4c   :  { %201 = vmatmul.f32.gmra.mxu0 %v147_v35  ;;  %242 = vmatmul.f32.gmra.mxu1 %v85_v25 }
  0x52   :  { %415 = vmatmul.f32.gmra.mxu3 %v86_v30  ;;  %286 = vmatmul.f32.gmra.mxu2 %v162_v38 }
  0x54   :  { %204 = vmatmul.f32.gmra.mxu0 %v146_v39  ;;  %245 = vmatmul.f32.gmra.mxu1 %v86_v30 }
  0x5a   :  { %418 = vmatmul.f32.gmra.mxu3 %v702_v58  ;;  %289 = vmatmul.f32.gmra.mxu2 %v169_v40 }
  0x5c   :  { %207 = vmatmul.f32.gmra.mxu0 %v145_v41  ;;  %248 = vmatmul.f32.gmra.mxu1 %v702_v58 }
  0xa1   :  { %v187_v43 = vpop.f32.mrf.mxu0  ;;  %v228_v44 = vpop.f32.mrf.mxu1 }
  0xa2   :  { %v229_v45 = vadd.f32 %v228_v44, %v187_v43 }
  0xa5   :  { %v269_v46 = vpop.f32.mrf.mxu2  ;;  %v398_v47 = vpop.f32.mrf.mxu3 }
  0xa6   :  { %v270_v48 = vadd.f32 %v269_v46, %v229_v45  ;;  %v439_v21 = vmul.f32 %v398_v47, %v398_v47 }
  0xa8   :  { %317 = vst [vmem:[%s857_s3] sm:$0xff] %v270_v48  ;;  %v342_v7 = vmul.f32 %v270_v48, %v270_v48 }
  0xa9   :  { %v190_v49 = vpop.f32.mrf.mxu0  ;;  %v231_v50 = vpop.f32.mrf.mxu1 }
  0xaa   :  { %v232_v51 = vadd.f32 %v231_v50, %v190_v49 }
  0xad   :  { %v272_v52 = vpop.f32.mrf.mxu2  ;;  %v401_v53 = vpop.f32.mrf.mxu3 }
  0xae   :  { %v273_v54 = vadd.f32 %v272_v52, %v232_v51  ;;  %v440_v17 = vmul.f32 %v401_v53, %v401_v53  ;;  %v423_v25 = vadd.f32 %v401_v53, %v398_v47  ;;  %v325_v52 = vld [vmem:[%s858_s4] sm:$0x1] }
  0xb0   :  { %318 = vst [vmem:[%s857_s3 + $0x8] sm:$0xff] %v273_v54  ;;  %v343_v8 = vmul.f32 %v273_v54, %v273_v54  ;;  %v326_v10 = vadd.f32 %v273_v54, %v270_v48  ;;  %v447_v28 = vadd.f32 %v440_v17, %v439_v21 }
  0xb1   :  { %v193_v55 = vpop.f32.mrf.mxu0  ;;  %v234_v56 = vpop.f32.mrf.mxu1 }
  0xb2   :  { %v350_v14 = vadd.f32 %v343_v8, %v342_v7 }
  0xb5   :  { %v275_v57 = vpop.f32.mrf.mxu2  ;;  %v404_v58 = vpop.f32.mrf.mxu3 }
  0xb6   :  { %v441_v22 = vmul.f32 %v404_v58, %v404_v58  ;;  %v424_v30 = vadd.f32 %v423_v25, %v404_v58  ;;  %v341_v57 = vld [vmem:[%s858_s4 + $0x1] sm:$0x1] }
  0xb8   :  { %v448_v33 = vadd.f32 %v447_v28, %v441_v22 }
  0xb9   :  { %v196_v59 = vpop.f32.mrf.mxu0  ;;  %v237_v60 = vpop.f32.mrf.mxu1 }
  0xbd   :  { %v278_v61 = vpop.f32.mrf.mxu2  ;;  %v407_v62 = vpop.f32.mrf.mxu3 }
  0xbe   :  { %v442_v29 = vmul.f32 %v407_v62, %v407_v62  ;;  %v425_v37 = vadd.f32 %v424_v30, %v407_v62 }
  0xc0   :  { %v449_v40 = vadd.f32 %v448_v33, %v442_v29 }
  0xc1   :  { %v199_v63 = vpop.f32.mrf.mxu0  ;;  %v240_v0 = vpop.f32.mrf.mxu1 }
  0xc2   :  { %v241_v1 = vadd.f32 %v240_v0, %v199_v63 }
  0xc5   :  { %v281_v2 = vpop.f32.mrf.mxu2  ;;  %v410_v3 = vpop.f32.mrf.mxu3 }
  0xc6   :  { %v282_v4 = vadd.f32 %v281_v2, %v241_v1  ;;  %v443_v34 = vmul.f32 %v410_v3, %v410_v3  ;;  %v426_v42 = vadd.f32 %v425_v37, %v410_v3 }
  0xc8   :  { %321 = vst [vmem:[%s857_s3 + $0x20] sm:$0xff] %v282_v4  ;;  %v346_v11 = vmul.f32 %v282_v4, %v282_v4  ;;  %v329_v15 = vadd.f32 %v326_v10, %v282_v4  ;;  %v450_v45 = vadd.f32 %v449_v40, %v443_v34 }
  0xc9   :  { %v202_v5 = vpop.f32.mrf.mxu0  ;;  %v243_v6 = vpop.f32.mrf.mxu1 }
  0xca   :  { %v244_v9 = vadd.f32 %v243_v6, %v202_v5  ;;  %v353_v18 = vadd.f32 %v350_v14, %v346_v11 }
  0xcd   :  { %v284_v12 = vpop.f32.mrf.mxu2  ;;  %v413_v13 = vpop.f32.mrf.mxu3 }
  0xce   :  { %v285_v16 = vadd.f32 %v284_v12, %v244_v9  ;;  %v444_v41 = vmul.f32 %v413_v13, %v413_v13  ;;  %v427_v51 = vadd.f32 %v426_v42, %v413_v13  ;;  %v422_v12 = vld [vmem:[%s858_s4 + $0x2] sm:$0x1] }
  0xd0   :  { %322 = vst [vmem:[%s857_s3 + $0x28] sm:$0xff] %v285_v16  ;;  %v330_v19 = vadd.f32 %v329_v15, %v285_v16  ;;  %v347_v20 = vmul.f32 %v285_v16, %v285_v16  ;;  %v451_v53 = vadd.f32 %v450_v45, %v444_v41  ;;  %v438_v15 = vld [vmem:[%s858_s4 + $0x3] sm:$0x1] }
  0xd1   :  { %v205_v23 = vpop.f32.mrf.mxu0  ;;  %v246_v24 = vpop.f32.mrf.mxu1 }
  0xd2   :  { %v333_v26 = vrot.slane %v330_v19, 4  ;;  %v354_v27 = vadd.f32 %v353_v18, %v347_v20 }
  0xd4   :  { %v334_v31 = vadd.f32 %v333_v26, %v330_v19  ;;  %v357_v32 = vrot.slane %v354_v27, 4 }
  0xd5   :  { %v416_v35 = vpop.f32.mrf.mxu3  ;;  %v287_v36 = vpop.f32.mrf.mxu2 }
  0xd6   :  { %v335_v38 = vrot.slane %v334_v31, 2  ;;  %v358_v39 = vadd.f32 %v357_v32, %v354_v27  ;;  %v445_v46 = vmul.f32 %v416_v35, %v416_v35  ;;  %v428_v56 = vadd.f32 %v427_v51, %v416_v35 }
  0xd8   :  { %v336_v43 = vadd.f32 %v335_v38, %v334_v31  ;;  %v359_v44 = vrot.slane %v358_v39, 2  ;;  %v452_v58 = vadd.f32 %v451_v53, %v445_v46 }
  0xd9   :  { %v208_v47 = vpop.f32.mrf.mxu0  ;;  %v249_v48 = vpop.f32.mrf.mxu1 }
  0xda   :  { %v337_v49 = vrot.slane %v336_v43, 1  ;;  %v360_v50 = vadd.f32 %v359_v44, %v358_v39 }
  0xdc   :  { %v338_v54 = vadd.f32 %v337_v49, %v336_v43  ;;  %v361_v55 = vrot.slane %v360_v50, 1 }
  0xdd   :  { %v419_v59 = vpop.f32.mrf.mxu3  ;;  %v290_v60 = vpop.f32.mrf.mxu2 }
  0xde   :  { %v339_v61 = vadd.f32 %v338_v54, %v325_v52  ;;  %v362_v62 = vadd.f32 %v361_v55, %v360_v50  ;;  %v429_v63 = vadd.f32 %v428_v56, %v419_v59  ;;  %v446_v0 = vmul.f32 %v419_v59, %v419_v59 }
  0xe0   :  { %340 = vst [vmem:[%s858_s4] sm:$0x1] %v339_v61  ;;  %v363_v1 = vadd.f32 %v362_v62, %v341_v57  ;;  %v430_v2 = vrot.slane %v429_v63, 4  ;;  %v453_v3 = vadd.f32 %v452_v58, %v446_v0 }
  0xe2   :  { %364 = vst [vmem:[%s858_s4 + $0x1] sm:$0x1] %v363_v1  ;;  %v431_v4 = vadd.f32 %v430_v2, %v429_v63  ;;  %v454_v5 = vrot.slane %v453_v3, 4 }
  0xe4   :  { %v432_v6 = vrot.slane %v431_v4, 2  ;;  %v455_v7 = vadd.f32 %v454_v5, %v453_v3 }
  0xe6   :  { %v433_v8 = vadd.f32 %v432_v6, %v431_v4  ;;  %v456_v9 = vrot.slane %v455_v7, 2 }
  0xe8   :  { %v434_v10 = vrot.slane %v433_v8, 1  ;;  %v457_v11 = vadd.f32 %v456_v9, %v455_v7 }
  0xea   :  { %v435_v13 = vadd.f32 %v434_v10, %v433_v8  ;;  %v458_v14 = vrot.slane %v457_v11, 1 }
  0xec   :  { %v436_v16 = vadd.f32 %v435_v13, %v422_v12  ;;  %v459_v17 = vadd.f32 %v458_v14, %v457_v11 }
  0xee   :  { %437 = vst [vmem:[%s858_s4 + $0x2] sm:$0x1] %v436_v16  ;;  %v460_v18 = vadd.f32 %v459_v17, %v438_v15 }
  0xf0   :  { %461 = vst [vmem:[%s858_s4 + $0x3] sm:$0x1] %v460_v18 }

</bundles_post_ra>
